<compile_context>
chip_gen: v6e
topology: v6e:2x2x1
jax: 0.10.0
libtpu: 0.0.40
codegen_flags: <defaults>
</compile_context>

<pallas_src>
import functools

import numpy as np

import jax
import jax.numpy as jnp
from jax.experimental import pallas as pl
from jax.experimental.pallas import tpu as pltpu

NEG_SLOPE = 0.01      # nn.LeakyReLU() default negative_slope
N_CLASSES = 10
C1_PAD = 8            # conv1 out channels padded 6 -> 8  (conv2 input channel stride)
C2_PAD = 32           # conv2 out channels padded 9 -> 32 (4*32 = 128 lane-dense output)
SLAB1 = 16            # rows stored per image for conv1 outputs (12 valid + 4 pad)
SLAB2 = 8             # rows stored per image for conv2 outputs (4 valid + 4 pad)


# ---------------------------------------------------------------------------
# Pallas kernels
# ---------------------------------------------------------------------------

def _conv_pool_kernel(x_ref, band_ref, bias_ref, o_ref, *, kh):
    """LeakyReLU( max_{pool taps (pi,pj)} Sum_{di} rows[pi+di] @ band[di,pj] + bias ).

    x_ref    : (2, 3, M, K) bf16 -- activation rows pre-split by row parity r and row
               shift a; the slab for (pool row pi, kernel row di) is the contiguous
               2-D block [r=(pi+di)%2, a=(pi+di)//2]  (M = images_per_step * stride).
    band_ref : (kh, 2, K, N) bf16 -- banded (Toeplitz over W) conv weights per
               (kernel row di, pool column offset pj); N = W_out * C_out_padded.
    bias_ref : (1, N) f32,  o_ref : (M, N).
    """
    slabs = [x_ref[s % 2, s // 2, :, :] for s in range(kh + 1)]
    pooled = None
    for pi in range(2):
        for pj in range(2):
            acc = None
            for di in range(kh):
                d = jnp.dot(slabs[pi + di], band_ref[di, pj, :, :],
                            preferred_element_type=jnp.float32)
                acc = d if acc is None else acc + d
            pooled = acc if pooled is None else jnp.maximum(pooled, acc)
    y = pooled + bias_ref[...]
    y = jnp.maximum(y, NEG_SLOPE * y)                      # LeakyReLU (VPU, free)
    o_ref[...] = y.astype(o_ref.dtype)


def _tail_kernel(p_ref, w3_ref, b3_ref, w4_ref, b4_ref, w5_ref, b5_ref, o_ref):
    """conv3 (block-diagonal matmul) + LeakyReLU + fc1 + LeakyReLU + fc2, fused."""
    x = p_ref[...]                                                     # (M, 324) bf16
    t = jnp.dot(x, w3_ref[...], preferred_element_type=jnp.float32) + b3_ref[...]
    t = jnp.maximum(t, NEG_SLOPE * t)                                  # (M, 54)
    u = jnp.dot(t.astype(jnp.bfloat16), w4_ref[...],
                preferred_element_type=jnp.float32) + b4_ref[...]
    u = jnp.maximum(u, NEG_SLOPE * u)                                  # (M, 128)
    v = jnp.dot(u.astype(jnp.bfloat16), w5_ref[...],
                preferred_element_type=jnp.float32) + b5_ref[...]
    o_ref[...] = v                                                     # (M, 128) f32


# ---------------------------------------------------------------------------
# pallas_call wrappers
# ---------------------------------------------------------------------------

def _compiler_params():
    return pltpu.CompilerParams(dimension_semantics=("parallel",),
                                vmem_limit_bytes=32 * 1024 * 1024)


def _conv_stage(x_planes, bands, bias_row, *, block_b, slab_rows):
    _, _, total_rows, K = x_planes.shape
    kh, _, _, N = bands.shape
    rows_blk = block_b * slab_rows
    grid_n = total_rows // rows_blk
    return pl.pallas_call(
        functools.partial(_conv_pool_kernel, kh=kh),
        out_shape=jax.ShapeDtypeStruct((total_rows, N), jnp.bfloat16),
        grid=(grid_n,),
        in_specs=[
            pl.BlockSpec((2, 3, rows_blk, K), lambda i: (0, 0, i, 0)),  # batch tiles
            pl.BlockSpec((kh, 2, K, N), lambda i: (0, 0, 0, 0)),        # weights resident
            pl.BlockSpec((1, N), lambda i: (0, 0)),                     # bias resident
        ],
        out_specs=pl.BlockSpec((rows_blk, N), lambda i: (i, 0)),
        compiler_params=_compiler_params(),
    )(x_planes, bands, bias_row)


def _tail_stage(patches, params, *, block_b):
    Bp, Kp = patches.shape
    w3, b3 = params["w3"], params["b3"]
    w4, b4 = params["w4"], params["b4"]
    w5, b5 = params["w5"], params["b5"]
    resident = lambda a: pl.BlockSpec(a.shape, lambda i: (0, 0))
    return pl.pallas_call(
        _tail_kernel,
        out_shape=jax.ShapeDtypeStruct((Bp, 128), jnp.float32),
        grid=(Bp // block_b,),
        in_specs=[
            pl.BlockSpec((block_b, Kp), lambda i: (i, 0)),
            resident(w3), resident(b3),
            resident(w4), resident(b4),
            resident(w5), resident(b5),
        ],
        out_specs=pl.BlockSpec((block_b, 128), lambda i: (i, 0)),
        compiler_params=_compiler_params(),
    )(patches, w3, b3, w4, b4, w5, b5)


# ---------------------------------------------------------------------------
# Host-side glue (tiny tensors only) + forward pass
# ---------------------------------------------------------------------------

def _pick_block_b(B):
    if B >= 32:
        return 16          # >=2 grid tiles so the v7x megacore split has work
    if B >= 16:
        return 8
    return B


def _prep_conv_input(rows, slab_rows):
    """(Bp, H, K) activation rows -> (2, 3, Bp*slab_rows, K) parity/shift planes.

    Plane [r, a] holds, for every image b and output row i, input row 2*(i+a)+r, so
    each (pool row pi, kernel row di) term in the kernel is one contiguous 2-D slab.
    """
    Bp, H, K = rows.shape
    h2 = H // 2
    p = jnp.transpose(rows.reshape(Bp, h2, 2, K), (2, 0, 1, 3))        # (2, Bp, h2, K)
    p = jnp.pad(p, ((0, 0), (0, 0), (0, 2 + slab_rows - h2), (0, 0)))
    shifted = jnp.stack([p[:, :, a:a + slab_rows, :] for a in range(3)], axis=1)
    return shifted.reshape(2, 3, Bp * slab_rows, K)


def cnn2_forward(params, x_nchw):
    """CNN2.forward with nlin='leakyrelu'.  Input (B, C_in, 28, 28): the 28x28
    spatial size is required by Linear(3*3*6, 20), exactly as in the torch module."""
    # TODO(synk): training-mode Dropout masks are not implemented (inference identity).
    B, cin, H, W = x_nchw.shape
    block_b = _pick_block_b(B)
    Bp = -(-B // block_b) * block_b

    # ---- Conv2d(cin, 6, 5) -> MaxPool2d(2,2) -> LeakyReLU (one kernel) -----------
    x = jnp.transpose(x_nchw, (0, 2, 3, 1)).astype(jnp.bfloat16)       # (B, 28, 28, cin)
    x = x.reshape(B, H, W * cin)                                       # rows of W*C lanes
    if Bp != B:
        x = jnp.pad(x, ((0, Bp - B), (0, 0), (0, 0)))
    x1 = _prep_conv_input(x, SLAB1)                                    # (2, 3, Bp*16, 84)
    y1 = _conv_stage(x1, params["band1"], params["bias1"],
                     block_b=block_b, slab_rows=SLAB1)                 # (Bp*16, 96) bf16

    # ---- Conv2d(6, 9, 5) -> MaxPool2d(2,2) -> LeakyReLU (one kernel) -------------
    r2 = y1.reshape(Bp, SLAB1, 12 * C1_PAD)[:, :12]                    # (Bp, 12, 96)
    x2 = _prep_conv_input(r2, SLAB2)                                   # (2, 3, Bp*8, 96)
    y2 = _conv_stage(x2, params["band2"], params["bias2"],
                     block_b=block_b, slab_rows=SLAB2)                 # (Bp*8, 128) bf16

    # ---- fused tail: Conv2d(9,6,2) -> LeakyReLU -> Flatten -> Linear(54,20)
    #      -> LeakyReLU -> Linear(20,10) (one kernel) ------------------------------
    z = y2.reshape(Bp, SLAB2, 4 * C2_PAD)[:, :4]                       # (Bp, 4, 128)
    z = z.reshape(Bp, 4, 4, C2_PAD)[..., :9]                           # (Bp, 4, 4, 9)
    pats = [z[:, ph:ph + 2, pw:pw + 2, :].reshape(Bp, 36)
            for ph in range(3) for pw in range(3)]
    patches = jnp.concatenate(pats, axis=1)                            # (Bp, 324) bf16
    out = _tail_stage(patches, params, block_b=block_b)                # (Bp, 128) f32
    return out[:B, :N_CLASSES]


# ---------------------------------------------------------------------------
# Parameter construction (torch-layout weights -> banded / fused layouts)
# ---------------------------------------------------------------------------

def _pool_bands(w_conv, cin_pad, w_in, w_out, no_pad):
    """band[di, pj, w*cin_pad + c, j*no_pad + o] = W[o, c, di, w - 2j - pj]."""
    O, Cin, KH, KW = w_conv.shape
    bands = np.zeros((KH, 2, w_in * cin_pad, w_out * no_pad), np.float32)
    for di in range(KH):
        for pj in range(2):
            for j in range(w_out):
                for dj in range(KW):
                    w = 2 * j + pj + dj
                    if w >= w_in:
                        continue
                    bands[di, pj,
                          w * cin_pad: w * cin_pad + Cin,
                          j * no_pad: j * no_pad + O] = w_conv[:, :, di, dj].T
    return bands


def _pool_bias(val, n_real, no_pad, w_out):
    row = np.zeros((1, w_out * no_pad), np.float32)
    for j in range(w_out):
        row[0, j * no_pad: j * no_pad + n_real] = val
    return row


def _conv3_blockdiag(w3):
    """(6, 9, 2, 2) conv3 weights -> (324, 54) block-diagonal matmul over 3x3 positions."""
    O, Cin, KH, KW = w3.shape
    tap = KH * KW * Cin                                    # 36
    mat = np.zeros((9 * tap, 9 * O), np.float32)
    for p in range(9):                                     # output position h*3 + w
        for dh in range(KH):
            for dw in range(KW):
                r0 = p * tap + (dh * KW + dw) * Cin
                mat[r0:r0 + Cin, p * O:p * O + O] = w3[:, :, dh, dw].T
    return mat


def init_params(key, channels_in=3):
    """CNN2 shapes with init_type='uniform' (weights ~ U(0,1), biases = 0.01)."""
    ks = jax.random.split(key, 5)
    bias = 0.01
    w1 = np.asarray(jax.random.uniform(ks[0], (6, channels_in, 5, 5), jnp.float32))
    w2 = np.asarray(jax.random.uniform(ks[1], (9, 6, 5, 5), jnp.float32))
    w3 = np.asarray(jax.random.uniform(ks[2], (6, 9, 2, 2), jnp.float32))
    wf1 = np.asarray(jax.random.uniform(ks[3], (20, 54), jnp.float32))
    wf2 = np.asarray(jax.random.uniform(ks[4], (N_CLASSES, 20), jnp.float32))

    band1 = _pool_bands(w1, cin_pad=channels_in, w_in=28, w_out=12, no_pad=C1_PAD)
    band2 = _pool_bands(w2, cin_pad=C1_PAD, w_in=12, w_out=4, no_pad=C2_PAD)
    bias1 = _pool_bias(bias, n_real=6, no_pad=C1_PAD, w_out=12)
    bias2 = _pool_bias(bias, n_real=9, no_pad=C2_PAD, w_out=4)

    w3d = _conv3_blockdiag(w3)                                          # (324, 54)
    b3 = np.full((1, 54), bias, np.float32)

    # fc1: fold torch's NCHW flatten order (c, h, w) into the rows; our conv3 output
    # lanes are ordered (h*3 + w)*6 + c.
    w4 = wf1.reshape(20, 6, 9).transpose(2, 1, 0).reshape(54, 20)
    w4 = np.pad(w4, ((0, 0), (0, 128 - 20)))
    b4 = np.zeros((1, 128), np.float32)
    b4[0, :20] = bias

    w5 = np.zeros((128, 128), np.float32)
    w5[:20, :N_CLASSES] = wf2.T
    b5 = np.zeros((1, 128), np.float32)
    b5[0, :N_CLASSES] = bias

    bf = lambda a: jnp.asarray(a, jnp.bfloat16)
    f32 = lambda a: jnp.asarray(a, jnp.float32)
    return {
        "band1": bf(band1), "bias1": f32(bias1),
        "band2": bf(band2), "bias2": f32(bias2),
        "w3": bf(w3d), "b3": f32(b3),
        "w4": bf(w4), "b4": f32(b4),
        "w5": bf(w5), "b5": f32(b5),
    }


if __name__ == "__main__":
    key = jax.random.PRNGKey(0)
    pkey, xkey = jax.random.split(key)
    params = init_params(pkey, channels_in=3)
    # 28x28 input is required by Linear(3*3*6, 20), exactly as in the torch module.
    x = jax.random.normal(xkey, (2, 3, 28, 28), dtype=jnp.float32)      # NCHW
    out = jax.jit(cnn2_forward)(params, x)
    out = jax.block_until_ready(out)
    assert out.shape == (2, N_CLASSES) and out.dtype == jnp.float32
    print("KERNEL_OK")
</pallas_src>

<mosaic_0001>
module attributes {stable_mosaic.version = 11 : i64} {
  func.func @_conv_pool_kernel(%arg0: i32, %arg1: memref<2x3x32x84xbf16, #tpu.memory_space<vmem>>, %arg2: memref<5x2x84x96xbf16, #tpu.memory_space<vmem>>, %arg3: memref<1x96xf32, #tpu.memory_space<vmem>>, %arg4: memref<32x96xbf16, #tpu.memory_space<vmem>>) attributes {dimension_semantics = [#tpu.dimension_semantics<parallel>], iteration_bounds = array<i64: 1>, scalar_prefetch = 0 : i64, scratch_operands = 0 : i64, tpu.core_type = #tpu.core_type<tc>, window_params = [{transform_indices = @transform_0, window_bounds = array<i64: 2, 3, 32, 84>}, {pipeline_mode = #tpu.pipeline_mode<synchronous>, transform_indices = @transform_1, window_bounds = array<i64: 5, 2, 84, 96>}, {pipeline_mode = #tpu.pipeline_mode<synchronous>, transform_indices = @transform_2, window_bounds = array<i64: 1, 96>}, {transform_indices = @transform_3, window_bounds = array<i64: 32, 96>}]} {
    %c0 = arith.constant 0 : index
    %c0_0 = arith.constant 0 : index
    %c0_1 = arith.constant 0 : index
    %c0_2 = arith.constant 0 : index
    %0 = vector.load %arg1[%c0, %c0_0, %c0_1, %c0_2] : memref<2x3x32x84xbf16, #tpu.memory_space<vmem>>, vector<1x1x32x84xbf16>
    %1 = vector.shape_cast %0 : vector<1x1x32x84xbf16> to vector<32x84xbf16>
    %c1 = arith.constant 1 : index
    %c0_3 = arith.constant 0 : index
    %c0_4 = arith.constant 0 : index
    %c0_5 = arith.constant 0 : index
    %2 = vector.load %arg1[%c1, %c0_3, %c0_4, %c0_5] : memref<2x3x32x84xbf16, #tpu.memory_space<vmem>>, vector<1x1x32x84xbf16>
    %3 = vector.shape_cast %2 : vector<1x1x32x84xbf16> to vector<32x84xbf16>
    %c0_6 = arith.constant 0 : index
    %c1_7 = arith.constant 1 : index
    %c0_8 = arith.constant 0 : index
    %c0_9 = arith.constant 0 : index
    %4 = vector.load %arg1[%c0_6, %c1_7, %c0_8, %c0_9] : memref<2x3x32x84xbf16, #tpu.memory_space<vmem>>, vector<1x1x32x84xbf16>
    %5 = vector.shape_cast %4 : vector<1x1x32x84xbf16> to vector<32x84xbf16>
    %c1_10 = arith.constant 1 : index
    %c1_11 = arith.constant 1 : index
    %c0_12 = arith.constant 0 : index
    %c0_13 = arith.constant 0 : index
    %6 = vector.load %arg1[%c1_10, %c1_11, %c0_12, %c0_13] : memref<2x3x32x84xbf16, #tpu.memory_space<vmem>>, vector<1x1x32x84xbf16>
    %7 = vector.shape_cast %6 : vector<1x1x32x84xbf16> to vector<32x84xbf16>
    %c0_14 = arith.constant 0 : index
    %c2 = arith.constant 2 : index
    %c0_15 = arith.constant 0 : index
    %c0_16 = arith.constant 0 : index
    %8 = vector.load %arg1[%c0_14, %c2, %c0_15, %c0_16] : memref<2x3x32x84xbf16, #tpu.memory_space<vmem>>, vector<1x1x32x84xbf16>
    %9 = vector.shape_cast %8 : vector<1x1x32x84xbf16> to vector<32x84xbf16>
    %c1_17 = arith.constant 1 : index
    %c2_18 = arith.constant 2 : index
    %c0_19 = arith.constant 0 : index
    %c0_20 = arith.constant 0 : index
    %10 = vector.load %arg1[%c1_17, %c2_18, %c0_19, %c0_20] : memref<2x3x32x84xbf16, #tpu.memory_space<vmem>>, vector<1x1x32x84xbf16>
    %11 = vector.shape_cast %10 : vector<1x1x32x84xbf16> to vector<32x84xbf16>
    %c0_21 = arith.constant 0 : index
    %c0_22 = arith.constant 0 : index
    %c0_23 = arith.constant 0 : index
    %c0_24 = arith.constant 0 : index
    %12 = vector.load %arg2[%c0_21, %c0_22, %c0_23, %c0_24] : memref<5x2x84x96xbf16, #tpu.memory_space<vmem>>, vector<1x1x84x96xbf16>
    %13 = vector.shape_cast %12 : vector<1x1x84x96xbf16> to vector<84x96xbf16>
    %cst = arith.constant dense<0.000000e+00> : vector<32x96xf32>
    %14 = tpu.matmul %1, %13, %cst {dimension_numbers = #tpu.dot_dimension_numbers<[1], [0], [0], [1], [0, 0, 1, 1], [], []>} : vector<32x84xbf16>, vector<84x96xbf16>, vector<32x96xf32> -> vector<32x96xf32>
    %c1_25 = arith.constant 1 : index
    %c0_26 = arith.constant 0 : index
    %c0_27 = arith.constant 0 : index
    %c0_28 = arith.constant 0 : index
    %15 = vector.load %arg2[%c1_25, %c0_26, %c0_27, %c0_28] : memref<5x2x84x96xbf16, #tpu.memory_space<vmem>>, vector<1x1x84x96xbf16>
    %16 = vector.shape_cast %15 : vector<1x1x84x96xbf16> to vector<84x96xbf16>
    %cst_29 = arith.constant dense<0.000000e+00> : vector<32x96xf32>
    %17 = tpu.matmul %3, %16, %cst_29 {dimension_numbers = #tpu.dot_dimension_numbers<[1], [0], [0], [1], [0, 0, 1, 1], [], []>} : vector<32x84xbf16>, vector<84x96xbf16>, vector<32x96xf32> -> vector<32x96xf32>
    %18 = arith.addf %14, %17 : vector<32x96xf32>
    %c2_30 = arith.constant 2 : index
    %c0_31 = arith.constant 0 : index
    %c0_32 = arith.constant 0 : index
    %c0_33 = arith.constant 0 : index
    %19 = vector.load %arg2[%c2_30, %c0_31, %c0_32, %c0_33] : memref<5x2x84x96xbf16, #tpu.memory_space<vmem>>, vector<1x1x84x96xbf16>
    %20 = vector.shape_cast %19 : vector<1x1x84x96xbf16> to vector<84x96xbf16>
    %cst_34 = arith.constant dense<0.000000e+00> : vector<32x96xf32>
    %21 = tpu.matmul %5, %20, %cst_34 {dimension_numbers = #tpu.dot_dimension_numbers<[1], [0], [0], [1], [0, 0, 1, 1], [], []>} : vector<32x84xbf16>, vector<84x96xbf16>, vector<32x96xf32> -> vector<32x96xf32>
    %22 = arith.addf %18, %21 : vector<32x96xf32>
    %c3 = arith.constant 3 : index
    %c0_35 = arith.constant 0 : index
    %c0_36 = arith.constant 0 : index
    %c0_37 = arith.constant 0 : index
    %23 = vector.load %arg2[%c3, %c0_35, %c0_36, %c0_37] : memref<5x2x84x96xbf16, #tpu.memory_space<vmem>>, vector<1x1x84x96xbf16>
    %24 = vector.shape_cast %23 : vector<1x1x84x96xbf16> to vector<84x96xbf16>
    %cst_38 = arith.constant dense<0.000000e+00> : vector<32x96xf32>
    %25 = tpu.matmul %7, %24, %cst_38 {dimension_numbers = #tpu.dot_dimension_numbers<[1], [0], [0], [1], [0, 0, 1, 1], [], []>} : vector<32x84xbf16>, vector<84x96xbf16>, vector<32x96xf32> -> vector<32x96xf32>
    %26 = arith.addf %22, %25 : vector<32x96xf32>
    %c4 = arith.constant 4 : index
    %c0_39 = arith.constant 0 : index
    %c0_40 = arith.constant 0 : index
    %c0_41 = arith.constant 0 : index
    %27 = vector.load %arg2[%c4, %c0_39, %c0_40, %c0_41] : memref<5x2x84x96xbf16, #tpu.memory_space<vmem>>, vector<1x1x84x96xbf16>
    %28 = vector.shape_cast %27 : vector<1x1x84x96xbf16> to vector<84x96xbf16>
    %cst_42 = arith.constant dense<0.000000e+00> : vector<32x96xf32>
    %29 = tpu.matmul %9, %28, %cst_42 {dimension_numbers = #tpu.dot_dimension_numbers<[1], [0], [0], [1], [0, 0, 1, 1], [], []>} : vector<32x84xbf16>, vector<84x96xbf16>, vector<32x96xf32> -> vector<32x96xf32>
    %30 = arith.addf %26, %29 : vector<32x96xf32>
    %c0_43 = arith.constant 0 : index
    %c1_44 = arith.constant 1 : index
    %c0_45 = arith.constant 0 : index
    %c0_46 = arith.constant 0 : index
    %31 = vector.load %arg2[%c0_43, %c1_44, %c0_45, %c0_46] : memref<5x2x84x96xbf16, #tpu.memory_space<vmem>>, vector<1x1x84x96xbf16>
    %32 = vector.shape_cast %31 : vector<1x1x84x96xbf16> to vector<84x96xbf16>
    %cst_47 = arith.constant dense<0.000000e+00> : vector<32x96xf32>
    %33 = tpu.matmul %1, %32, %cst_47 {dimension_numbers = #tpu.dot_dimension_numbers<[1], [0], [0], [1], [0, 0, 1, 1], [], []>} : vector<32x84xbf16>, vector<84x96xbf16>, vector<32x96xf32> -> vector<32x96xf32>
    %c1_48 = arith.constant 1 : index
    %c1_49 = arith.constant 1 : index
    %c0_50 = arith.constant 0 : index
    %c0_51 = arith.constant 0 : index
    %34 = vector.load %arg2[%c1_48, %c1_49, %c0_50, %c0_51] : memref<5x2x84x96xbf16, #tpu.memory_space<vmem>>, vector<1x1x84x96xbf16>
    %35 = vector.shape_cast %34 : vector<1x1x84x96xbf16> to vector<84x96xbf16>
    %cst_52 = arith.constant dense<0.000000e+00> : vector<32x96xf32>
    %36 = tpu.matmul %3, %35, %cst_52 {dimension_numbers = #tpu.dot_dimension_numbers<[1], [0], [0], [1], [0, 0, 1, 1], [], []>} : vector<32x84xbf16>, vector<84x96xbf16>, vector<32x96xf32> -> vector<32x96xf32>
    %37 = arith.addf %33, %36 : vector<32x96xf32>
    %c2_53 = arith.constant 2 : index
    %c1_54 = arith.constant 1 : index
    %c0_55 = arith.constant 0 : index
    %c0_56 = arith.constant 0 : index
    %38 = vector.load %arg2[%c2_53, %c1_54, %c0_55, %c0_56] : memref<5x2x84x96xbf16, #tpu.memory_space<vmem>>, vector<1x1x84x96xbf16>
    %39 = vector.shape_cast %38 : vector<1x1x84x96xbf16> to vector<84x96xbf16>
    %cst_57 = arith.constant dense<0.000000e+00> : vector<32x96xf32>
    %40 = tpu.matmul %5, %39, %cst_57 {dimension_numbers = #tpu.dot_dimension_numbers<[1], [0], [0], [1], [0, 0, 1, 1], [], []>} : vector<32x84xbf16>, vector<84x96xbf16>, vector<32x96xf32> -> vector<32x96xf32>
    %41 = arith.addf %37, %40 : vector<32x96xf32>
    %c3_58 = arith.constant 3 : index
    %c1_59 = arith.constant 1 : index
    %c0_60 = arith.constant 0 : index
    %c0_61 = arith.constant 0 : index
    %42 = vector.load %arg2[%c3_58, %c1_59, %c0_60, %c0_61] : memref<5x2x84x96xbf16, #tpu.memory_space<vmem>>, vector<1x1x84x96xbf16>
    %43 = vector.shape_cast %42 : vector<1x1x84x96xbf16> to vector<84x96xbf16>
    %cst_62 = arith.constant dense<0.000000e+00> : vector<32x96xf32>
    %44 = tpu.matmul %7, %43, %cst_62 {dimension_numbers = #tpu.dot_dimension_numbers<[1], [0], [0], [1], [0, 0, 1, 1], [], []>} : vector<32x84xbf16>, vector<84x96xbf16>, vector<32x96xf32> -> vector<32x96xf32>
    %45 = arith.addf %41, %44 : vector<32x96xf32>
    %c4_63 = arith.constant 4 : index
    %c1_64 = arith.constant 1 : index
    %c0_65 = arith.constant 0 : index
    %c0_66 = arith.constant 0 : index
    %46 = vector.load %arg2[%c4_63, %c1_64, %c0_65, %c0_66] : memref<5x2x84x96xbf16, #tpu.memory_space<vmem>>, vector<1x1x84x96xbf16>
    %47 = vector.shape_cast %46 : vector<1x1x84x96xbf16> to vector<84x96xbf16>
    %cst_67 = arith.constant dense<0.000000e+00> : vector<32x96xf32>
    %48 = tpu.matmul %9, %47, %cst_67 {dimension_numbers = #tpu.dot_dimension_numbers<[1], [0], [0], [1], [0, 0, 1, 1], [], []>} : vector<32x84xbf16>, vector<84x96xbf16>, vector<32x96xf32> -> vector<32x96xf32>
    %49 = arith.addf %45, %48 : vector<32x96xf32>
    %50 = arith.maximumf %30, %49 : vector<32x96xf32>
    %c0_68 = arith.constant 0 : index
    %c0_69 = arith.constant 0 : index
    %c0_70 = arith.constant 0 : index
    %c0_71 = arith.constant 0 : index
    %51 = vector.load %arg2[%c0_68, %c0_69, %c0_70, %c0_71] : memref<5x2x84x96xbf16, #tpu.memory_space<vmem>>, vector<1x1x84x96xbf16>
    %52 = vector.shape_cast %51 : vector<1x1x84x96xbf16> to vector<84x96xbf16>
    %cst_72 = arith.constant dense<0.000000e+00> : vector<32x96xf32>
    %53 = tpu.matmul %3, %52, %cst_72 {dimension_numbers = #tpu.dot_dimension_numbers<[1], [0], [0], [1], [0, 0, 1, 1], [], []>} : vector<32x84xbf16>, vector<84x96xbf16>, vector<32x96xf32> -> vector<32x96xf32>
    %c1_73 = arith.constant 1 : index
    %c0_74 = arith.constant 0 : index
    %c0_75 = arith.constant 0 : index
    %c0_76 = arith.constant 0 : index
    %54 = vector.load %arg2[%c1_73, %c0_74, %c0_75, %c0_76] : memref<5x2x84x96xbf16, #tpu.memory_space<vmem>>, vector<1x1x84x96xbf16>
    %55 = vector.shape_cast %54 : vector<1x1x84x96xbf16> to vector<84x96xbf16>
    %cst_77 = arith.constant dense<0.000000e+00> : vector<32x96xf32>
    %56 = tpu.matmul %5, %55, %cst_77 {dimension_numbers = #tpu.dot_dimension_numbers<[1], [0], [0], [1], [0, 0, 1, 1], [], []>} : vector<32x84xbf16>, vector<84x96xbf16>, vector<32x96xf32> -> vector<32x96xf32>
    %57 = arith.addf %53, %56 : vector<32x96xf32>
    %c2_78 = arith.constant 2 : index
    %c0_79 = arith.constant 0 : index
    %c0_80 = arith.constant 0 : index
    %c0_81 = arith.constant 0 : index
    %58 = vector.load %arg2[%c2_78, %c0_79, %c0_80, %c0_81] : memref<5x2x84x96xbf16, #tpu.memory_space<vmem>>, vector<1x1x84x96xbf16>
    %59 = vector.shape_cast %58 : vector<1x1x84x96xbf16> to vector<84x96xbf16>
    %cst_82 = arith.constant dense<0.000000e+00> : vector<32x96xf32>
    %60 = tpu.matmul %7, %59, %cst_82 {dimension_numbers = #tpu.dot_dimension_numbers<[1], [0], [0], [1], [0, 0, 1, 1], [], []>} : vector<32x84xbf16>, vector<84x96xbf16>, vector<32x96xf32> -> vector<32x96xf32>
    %61 = arith.addf %57, %60 : vector<32x96xf32>
    %c3_83 = arith.constant 3 : index
    %c0_84 = arith.constant 0 : index
    %c0_85 = arith.constant 0 : index
    %c0_86 = arith.constant 0 : index
    %62 = vector.load %arg2[%c3_83, %c0_84, %c0_85, %c0_86] : memref<5x2x84x96xbf16, #tpu.memory_space<vmem>>, vector<1x1x84x96xbf16>
    %63 = vector.shape_cast %62 : vector<1x1x84x96xbf16> to vector<84x96xbf16>
    %cst_87 = arith.constant dense<0.000000e+00> : vector<32x96xf32>
    %64 = tpu.matmul %9, %63, %cst_87 {dimension_numbers = #tpu.dot_dimension_numbers<[1], [0], [0], [1], [0, 0, 1, 1], [], []>} : vector<32x84xbf16>, vector<84x96xbf16>, vector<32x96xf32> -> vector<32x96xf32>
    %65 = arith.addf %61, %64 : vector<32x96xf32>
    %c4_88 = arith.constant 4 : index
    %c0_89 = arith.constant 0 : index
    %c0_90 = arith.constant 0 : index
    %c0_91 = arith.constant 0 : index
    %66 = vector.load %arg2[%c4_88, %c0_89, %c0_90, %c0_91] : memref<5x2x84x96xbf16, #tpu.memory_space<vmem>>, vector<1x1x84x96xbf16>
    %67 = vector.shape_cast %66 : vector<1x1x84x96xbf16> to vector<84x96xbf16>
    %cst_92 = arith.constant dense<0.000000e+00> : vector<32x96xf32>
    %68 = tpu.matmul %11, %67, %cst_92 {dimension_numbers = #tpu.dot_dimension_numbers<[1], [0], [0], [1], [0, 0, 1, 1], [], []>} : vector<32x84xbf16>, vector<84x96xbf16>, vector<32x96xf32> -> vector<32x96xf32>
    %69 = arith.addf %65, %68 : vector<32x96xf32>
    %70 = arith.maximumf %50, %69 : vector<32x96xf32>
    %c0_93 = arith.constant 0 : index
    %c1_94 = arith.constant 1 : index
    %c0_95 = arith.constant 0 : index
    %c0_96 = arith.constant 0 : index
    %71 = vector.load %arg2[%c0_93, %c1_94, %c0_95, %c0_96] : memref<5x2x84x96xbf16, #tpu.memory_space<vmem>>, vector<1x1x84x96xbf16>
    %72 = vector.shape_cast %71 : vector<1x1x84x96xbf16> to vector<84x96xbf16>
    %cst_97 = arith.constant dense<0.000000e+00> : vector<32x96xf32>
    %73 = tpu.matmul %3, %72, %cst_97 {dimension_numbers = #tpu.dot_dimension_numbers<[1], [0], [0], [1], [0, 0, 1, 1], [], []>} : vector<32x84xbf16>, vector<84x96xbf16>, vector<32x96xf32> -> vector<32x96xf32>
    %c1_98 = arith.constant 1 : index
    %c1_99 = arith.constant 1 : index
    %c0_100 = arith.constant 0 : index
    %c0_101 = arith.constant 0 : index
    %74 = vector.load %arg2[%c1_98, %c1_99, %c0_100, %c0_101] : memref<5x2x84x96xbf16, #tpu.memory_space<vmem>>, vector<1x1x84x96xbf16>
    %75 = vector.shape_cast %74 : vector<1x1x84x96xbf16> to vector<84x96xbf16>
    %cst_102 = arith.constant dense<0.000000e+00> : vector<32x96xf32>
    %76 = tpu.matmul %5, %75, %cst_102 {dimension_numbers = #tpu.dot_dimension_numbers<[1], [0], [0], [1], [0, 0, 1, 1], [], []>} : vector<32x84xbf16>, vector<84x96xbf16>, vector<32x96xf32> -> vector<32x96xf32>
    %77 = arith.addf %73, %76 : vector<32x96xf32>
    %c2_103 = arith.constant 2 : index
    %c1_104 = arith.constant 1 : index
    %c0_105 = arith.constant 0 : index
    %c0_106 = arith.constant 0 : index
    %78 = vector.load %arg2[%c2_103, %c1_104, %c0_105, %c0_106] : memref<5x2x84x96xbf16, #tpu.memory_space<vmem>>, vector<1x1x84x96xbf16>
    %79 = vector.shape_cast %78 : vector<1x1x84x96xbf16> to vector<84x96xbf16>
    %cst_107 = arith.constant dense<0.000000e+00> : vector<32x96xf32>
    %80 = tpu.matmul %7, %79, %cst_107 {dimension_numbers = #tpu.dot_dimension_numbers<[1], [0], [0], [1], [0, 0, 1, 1], [], []>} : vector<32x84xbf16>, vector<84x96xbf16>, vector<32x96xf32> -> vector<32x96xf32>
    %81 = arith.addf %77, %80 : vector<32x96xf32>
    %c3_108 = arith.constant 3 : index
    %c1_109 = arith.constant 1 : index
    %c0_110 = arith.constant 0 : index
    %c0_111 = arith.constant 0 : index
    %82 = vector.load %arg2[%c3_108, %c1_109, %c0_110, %c0_111] : memref<5x2x84x96xbf16, #tpu.memory_space<vmem>>, vector<1x1x84x96xbf16>
    %83 = vector.shape_cast %82 : vector<1x1x84x96xbf16> to vector<84x96xbf16>
    %cst_112 = arith.constant dense<0.000000e+00> : vector<32x96xf32>
    %84 = tpu.matmul %9, %83, %cst_112 {dimension_numbers = #tpu.dot_dimension_numbers<[1], [0], [0], [1], [0, 0, 1, 1], [], []>} : vector<32x84xbf16>, vector<84x96xbf16>, vector<32x96xf32> -> vector<32x96xf32>
    %85 = arith.addf %81, %84 : vector<32x96xf32>
    %c4_113 = arith.constant 4 : index
    %c1_114 = arith.constant 1 : index
    %c0_115 = arith.constant 0 : index
    %c0_116 = arith.constant 0 : index
    %86 = vector.load %arg2[%c4_113, %c1_114, %c0_115, %c0_116] : memref<5x2x84x96xbf16, #tpu.memory_space<vmem>>, vector<1x1x84x96xbf16>
    %87 = vector.shape_cast %86 : vector<1x1x84x96xbf16> to vector<84x96xbf16>
    %cst_117 = arith.constant dense<0.000000e+00> : vector<32x96xf32>
    %88 = tpu.matmul %11, %87, %cst_117 {dimension_numbers = #tpu.dot_dimension_numbers<[1], [0], [0], [1], [0, 0, 1, 1], [], []>} : vector<32x84xbf16>, vector<84x96xbf16>, vector<32x96xf32> -> vector<32x96xf32>
    %89 = arith.addf %85, %88 : vector<32x96xf32>
    %90 = arith.maximumf %70, %89 : vector<32x96xf32>
    %c0_118 = arith.constant 0 : index
    %c0_119 = arith.constant 0 : index
    %91 = vector.load %arg3[%c0_118, %c0_119] : memref<1x96xf32, #tpu.memory_space<vmem>>, vector<1x96xf32>
    %92 = vector.broadcast %91 : vector<1x96xf32> to vector<32x96xf32>
    %93 = arith.addf %90, %92 : vector<32x96xf32>
    %cst_120 = arith.constant 0.00999999977 : f32
    %94 = vector.broadcast %cst_120 : f32 to vector<32x96xf32>
    %95 = arith.mulf %94, %93 : vector<32x96xf32>
    %96 = arith.maximumf %93, %95 : vector<32x96xf32>
    %97 = arith.truncf %96 : vector<32x96xf32> to vector<32x96xbf16>
    %c0_121 = arith.constant 0 : index
    %c0_122 = arith.constant 0 : index
    %98 = vector.load %arg4[%c0_121, %c0_122] : memref<32x96xbf16, #tpu.memory_space<vmem>>, vector<32x96xbf16>
    tpu.vector_store %arg4[%c0_121, %c0_122], %97 {strides = array<i32>} : memref<32x96xbf16, #tpu.memory_space<vmem>>, vector<32x96xbf16>,
    return
  }
  func.func @transform_0(%arg0: i32) -> (i32, i32, i32, i32) {
    %c0_i32 = arith.constant 0 : i32
    %c0_i32_0 = arith.constant 0 : i32
    %c0_i32_1 = arith.constant 0 : i32
    %c0_i32_2 = arith.constant 0 : i32
    return %c0_i32, %c0_i32_0, %arg0, %c0_i32_1 : i32, i32, i32, i32
  }
  func.func @transform_1(%arg0: i32) -> (i32, i32, i32, i32) {
    %c0_i32 = arith.constant 0 : i32
    %c0_i32_0 = arith.constant 0 : i32
    %c0_i32_1 = arith.constant 0 : i32
    %c0_i32_2 = arith.constant 0 : i32
    %c0_i32_3 = arith.constant 0 : i32
    return %c0_i32, %c0_i32_0, %c0_i32_1, %c0_i32_2 : i32, i32, i32, i32
  }
  func.func @transform_2(%arg0: i32) -> (i32, i32) {
    %c0_i32 = arith.constant 0 : i32
    %c0_i32_0 = arith.constant 0 : i32
    %c0_i32_1 = arith.constant 0 : i32
    return %c0_i32, %c0_i32_0 : i32, i32
  }
  func.func @transform_3(%arg0: i32) -> (i32, i32) {
    %c0_i32 = arith.constant 0 : i32
    %c0_i32_0 = arith.constant 0 : i32
    return %arg0, %c0_i32 : i32, i32
  }
}

module attributes {stable_mosaic.version = 11 : i64} {
  func.func @_conv_pool_kernel(%arg0: i32, %arg1: memref<2x3x16x96xbf16, #tpu.memory_space<vmem>>, %arg2: memref<5x2x96x128xbf16, #tpu.memory_space<vmem>>, %arg3: memref<1x128xf32, #tpu.memory_space<vmem>>, %arg4: memref<16x128xbf16, #tpu.memory_space<vmem>>) attributes {dimension_semantics = [#tpu.dimension_semantics<parallel>], iteration_bounds = array<i64: 1>, scalar_prefetch = 0 : i64, scratch_operands = 0 : i64, tpu.core_type = #tpu.core_type<tc>, window_params = [{transform_indices = @transform_0, window_bounds = array<i64: 2, 3, 16, 96>}, {pipeline_mode = #tpu.pipeline_mode<synchronous>, transform_indices = @transform_1, window_bounds = array<i64: 5, 2, 96, 128>}, {pipeline_mode = #tpu.pipeline_mode<synchronous>, transform_indices = @transform_2, window_bounds = array<i64: 1, 128>}, {transform_indices = @transform_3, window_bounds = array<i64: 16, 128>}]} {
    %c0 = arith.constant 0 : index
    %c0_0 = arith.constant 0 : index
    %c0_1 = arith.constant 0 : index
    %c0_2 = arith.constant 0 : index
    %0 = vector.load %arg1[%c0, %c0_0, %c0_1, %c0_2] : memref<2x3x16x96xbf16, #tpu.memory_space<vmem>>, vector<1x1x16x96xbf16>
    %1 = vector.shape_cast %0 : vector<1x1x16x96xbf16> to vector<16x96xbf16>
    %c1 = arith.constant 1 : index
    %c0_3 = arith.constant 0 : index
    %c0_4 = arith.constant 0 : index
    %c0_5 = arith.constant 0 : index
    %2 = vector.load %arg1[%c1, %c0_3, %c0_4, %c0_5] : memref<2x3x16x96xbf16, #tpu.memory_space<vmem>>, vector<1x1x16x96xbf16>
    %3 = vector.shape_cast %2 : vector<1x1x16x96xbf16> to vector<16x96xbf16>
    %c0_6 = arith.constant 0 : index
    %c1_7 = arith.constant 1 : index
    %c0_8 = arith.constant 0 : index
    %c0_9 = arith.constant 0 : index
    %4 = vector.load %arg1[%c0_6, %c1_7, %c0_8, %c0_9] : memref<2x3x16x96xbf16, #tpu.memory_space<vmem>>, vector<1x1x16x96xbf16>
    %5 = vector.shape_cast %4 : vector<1x1x16x96xbf16> to vector<16x96xbf16>
    %c1_10 = arith.constant 1 : index
    %c1_11 = arith.constant 1 : index
    %c0_12 = arith.constant 0 : index
    %c0_13 = arith.constant 0 : index
    %6 = vector.load %arg1[%c1_10, %c1_11, %c0_12, %c0_13] : memref<2x3x16x96xbf16, #tpu.memory_space<vmem>>, vector<1x1x16x96xbf16>
    %7 = vector.shape_cast %6 : vector<1x1x16x96xbf16> to vector<16x96xbf16>
    %c0_14 = arith.constant 0 : index
    %c2 = arith.constant 2 : index
    %c0_15 = arith.constant 0 : index
    %c0_16 = arith.constant 0 : index
    %8 = vector.load %arg1[%c0_14, %c2, %c0_15, %c0_16] : memref<2x3x16x96xbf16, #tpu.memory_space<vmem>>, vector<1x1x16x96xbf16>
    %9 = vector.shape_cast %8 : vector<1x1x16x96xbf16> to vector<16x96xbf16>
    %c1_17 = arith.constant 1 : index
    %c2_18 = arith.constant 2 : index
    %c0_19 = arith.constant 0 : index
    %c0_20 = arith.constant 0 : index
    %10 = vector.load %arg1[%c1_17, %c2_18, %c0_19, %c0_20] : memref<2x3x16x96xbf16, #tpu.memory_space<vmem>>, vector<1x1x16x96xbf16>
    %11 = vector.shape_cast %10 : vector<1x1x16x96xbf16> to vector<16x96xbf16>
    %c0_21 = arith.constant 0 : index
    %c0_22 = arith.constant 0 : index
    %c0_23 = arith.constant 0 : index
    %c0_24 = arith.constant 0 : index
    %12 = vector.load %arg2[%c0_21, %c0_22, %c0_23, %c0_24] : memref<5x2x96x128xbf16, #tpu.memory_space<vmem>>, vector<1x1x96x128xbf16>
    %13 = vector.shape_cast %12 : vector<1x1x96x128xbf16> to vector<96x128xbf16>
    %cst = arith.constant dense<0.000000e+00> : vector<16x128xf32>
    %14 = tpu.matmul %1, %13, %cst {dimension_numbers = #tpu.dot_dimension_numbers<[1], [0], [0], [1], [0, 0, 1, 1], [], []>} : vector<16x96xbf16>, vector<96x128xbf16>, vector<16x128xf32> -> vector<16x128xf32>
    %c1_25 = arith.constant 1 : index
    %c0_26 = arith.constant 0 : index
    %c0_27 = arith.constant 0 : index
    %c0_28 = arith.constant 0 : index
    %15 = vector.load %arg2[%c1_25, %c0_26, %c0_27, %c0_28] : memref<5x2x96x128xbf16, #tpu.memory_space<vmem>>, vector<1x1x96x128xbf16>
    %16 = vector.shape_cast %15 : vector<1x1x96x128xbf16> to vector<96x128xbf16>
    %cst_29 = arith.constant dense<0.000000e+00> : vector<16x128xf32>
    %17 = tpu.matmul %3, %16, %cst_29 {dimension_numbers = #tpu.dot_dimension_numbers<[1], [0], [0], [1], [0, 0, 1, 1], [], []>} : vector<16x96xbf16>, vector<96x128xbf16>, vector<16x128xf32> -> vector<16x128xf32>
    %18 = arith.addf %14, %17 : vector<16x128xf32>
    %c2_30 = arith.constant 2 : index
    %c0_31 = arith.constant 0 : index
    %c0_32 = arith.constant 0 : index
    %c0_33 = arith.constant 0 : index
    %19 = vector.load %arg2[%c2_30, %c0_31, %c0_32, %c0_33] : memref<5x2x96x128xbf16, #tpu.memory_space<vmem>>, vector<1x1x96x128xbf16>
    %20 = vector.shape_cast %19 : vector<1x1x96x128xbf16> to vector<96x128xbf16>
    %cst_34 = arith.constant dense<0.000000e+00> : vector<16x128xf32>
    %21 = tpu.matmul %5, %20, %cst_34 {dimension_numbers = #tpu.dot_dimension_numbers<[1], [0], [0], [1], [0, 0, 1, 1], [], []>} : vector<16x96xbf16>, vector<96x128xbf16>, vector<16x128xf32> -> vector<16x128xf32>
    %22 = arith.addf %18, %21 : vector<16x128xf32>
    %c3 = arith.constant 3 : index
    %c0_35 = arith.constant 0 : index
    %c0_36 = arith.constant 0 : index
    %c0_37 = arith.constant 0 : index
    %23 = vector.load %arg2[%c3, %c0_35, %c0_36, %c0_37] : memref<5x2x96x128xbf16, #tpu.memory_space<vmem>>, vector<1x1x96x128xbf16>
    %24 = vector.shape_cast %23 : vector<1x1x96x128xbf16> to vector<96x128xbf16>
    %cst_38 = arith.constant dense<0.000000e+00> : vector<16x128xf32>
    %25 = tpu.matmul %7, %24, %cst_38 {dimension_numbers = #tpu.dot_dimension_numbers<[1], [0], [0], [1], [0, 0, 1, 1], [], []>} : vector<16x96xbf16>, vector<96x128xbf16>, vector<16x128xf32> -> vector<16x128xf32>
    %26 = arith.addf %22, %25 : vector<16x128xf32>
    %c4 = arith.constant 4 : index
    %c0_39 = arith.constant 0 : index
    %c0_40 = arith.constant 0 : index
    %c0_41 = arith.constant 0 : index
    %27 = vector.load %arg2[%c4, %c0_39, %c0_40, %c0_41] : memref<5x2x96x128xbf16, #tpu.memory_space<vmem>>, vector<1x1x96x128xbf16>
    %28 = vector.shape_cast %27 : vector<1x1x96x128xbf16> to vector<96x128xbf16>
    %cst_42 = arith.constant dense<0.000000e+00> : vector<16x128xf32>
    %29 = tpu.matmul %9, %28, %cst_42 {dimension_numbers = #tpu.dot_dimension_numbers<[1], [0], [0], [1], [0, 0, 1, 1], [], []>} : vector<16x96xbf16>, vector<96x128xbf16>, vector<16x128xf32> -> vector<16x128xf32>
    %30 = arith.addf %26, %29 : vector<16x128xf32>
    %c0_43 = arith.constant 0 : index
    %c1_44 = arith.constant 1 : index
    %c0_45 = arith.constant 0 : index
    %c0_46 = arith.constant 0 : index
    %31 = vector.load %arg2[%c0_43, %c1_44, %c0_45, %c0_46] : memref<5x2x96x128xbf16, #tpu.memory_space<vmem>>, vector<1x1x96x128xbf16>
    %32 = vector.shape_cast %31 : vector<1x1x96x128xbf16> to vector<96x128xbf16>
    %cst_47 = arith.constant dense<0.000000e+00> : vector<16x128xf32>
    %33 = tpu.matmul %1, %32, %cst_47 {dimension_numbers = #tpu.dot_dimension_numbers<[1], [0], [0], [1], [0, 0, 1, 1], [], []>} : vector<16x96xbf16>, vector<96x128xbf16>, vector<16x128xf32> -> vector<16x128xf32>
    %c1_48 = arith.constant 1 : index
    %c1_49 = arith.constant 1 : index
    %c0_50 = arith.constant 0 : index
    %c0_51 = arith.constant 0 : index
    %34 = vector.load %arg2[%c1_48, %c1_49, %c0_50, %c0_51] : memref<5x2x96x128xbf16, #tpu.memory_space<vmem>>, vector<1x1x96x128xbf16>
    %35 = vector.shape_cast %34 : vector<1x1x96x128xbf16> to vector<96x128xbf16>
    %cst_52 = arith.constant dense<0.000000e+00> : vector<16x128xf32>
    %36 = tpu.matmul %3, %35, %cst_52 {dimension_numbers = #tpu.dot_dimension_numbers<[1], [0], [0], [1], [0, 0, 1, 1], [], []>} : vector<16x96xbf16>, vector<96x128xbf16>, vector<16x128xf32> -> vector<16x128xf32>
    %37 = arith.addf %33, %36 : vector<16x128xf32>
    %c2_53 = arith.constant 2 : index
    %c1_54 = arith.constant 1 : index
    %c0_55 = arith.constant 0 : index
    %c0_56 = arith.constant 0 : index
    %38 = vector.load %arg2[%c2_53, %c1_54, %c0_55, %c0_56] : memref<5x2x96x128xbf16, #tpu.memory_space<vmem>>, vector<1x1x96x128xbf16>
    %39 = vector.shape_cast %38 : vector<1x1x96x128xbf16> to vector<96x128xbf16>
    %cst_57 = arith.constant dense<0.000000e+00> : vector<16x128xf32>
    %40 = tpu.matmul %5, %39, %cst_57 {dimension_numbers = #tpu.dot_dimension_numbers<[1], [0], [0], [1], [0, 0, 1, 1], [], []>} : vector<16x96xbf16>, vector<96x128xbf16>, vector<16x128xf32> -> vector<16x128xf32>
    %41 = arith.addf %37, %40 : vector<16x128xf32>
    %c3_58 = arith.constant 3 : index
    %c1_59 = arith.constant 1 : index
    %c0_60 = arith.constant 0 : index
    %c0_61 = arith.constant 0 : index
    %42 = vector.load %arg2[%c3_58, %c1_59, %c0_60, %c0_61] : memref<5x2x96x128xbf16, #tpu.memory_space<vmem>>, vector<1x1x96x128xbf16>
    %43 = vector.shape_cast %42 : vector<1x1x96x128xbf16> to vector<96x128xbf16>
    %cst_62 = arith.constant dense<0.000000e+00> : vector<16x128xf32>
    %44 = tpu.matmul %7, %43, %cst_62 {dimension_numbers = #tpu.dot_dimension_numbers<[1], [0], [0], [1], [0, 0, 1, 1], [], []>} : vector<16x96xbf16>, vector<96x128xbf16>, vector<16x128xf32> -> vector<16x128xf32>
    %45 = arith.addf %41, %44 : vector<16x128xf32>
    %c4_63 = arith.constant 4 : index
    %c1_64 = arith.constant 1 : index
    %c0_65 = arith.constant 0 : index
    %c0_66 = arith.constant 0 : index
    %46 = vector.load %arg2[%c4_63, %c1_64, %c0_65, %c0_66] : memref<5x2x96x128xbf16, #tpu.memory_space<vmem>>, vector<1x1x96x128xbf16>
    %47 = vector.shape_cast %46 : vector<1x1x96x128xbf16> to vector<96x128xbf16>
    %cst_67 = arith.constant dense<0.000000e+00> : vector<16x128xf32>
    %48 = tpu.matmul %9, %47, %cst_67 {dimension_numbers = #tpu.dot_dimension_numbers<[1], [0], [0], [1], [0, 0, 1, 1], [], []>} : vector<16x96xbf16>, vector<96x128xbf16>, vector<16x128xf32> -> vector<16x128xf32>
    %49 = arith.addf %45, %48 : vector<16x128xf32>
    %50 = arith.maximumf %30, %49 : vector<16x128xf32>
    %c0_68 = arith.constant 0 : index
    %c0_69 = arith.constant 0 : index
    %c0_70 = arith.constant 0 : index
    %c0_71 = arith.constant 0 : index
    %51 = vector.load %arg2[%c0_68, %c0_69, %c0_70, %c0_71] : memref<5x2x96x128xbf16, #tpu.memory_space<vmem>>, vector<1x1x96x128xbf16>
    %52 = vector.shape_cast %51 : vector<1x1x96x128xbf16> to vector<96x128xbf16>
    %cst_72 = arith.constant dense<0.000000e+00> : vector<16x128xf32>
    %53 = tpu.matmul %3, %52, %cst_72 {dimension_numbers = #tpu.dot_dimension_numbers<[1], [0], [0], [1], [0, 0, 1, 1], [], []>} : vector<16x96xbf16>, vector<96x128xbf16>, vector<16x128xf32> -> vector<16x128xf32>
    %c1_73 = arith.constant 1 : index
    %c0_74 = arith.constant 0 : index
    %c0_75 = arith.constant 0 : index
    %c0_76 = arith.constant 0 : index
    %54 = vector.load %arg2[%c1_73, %c0_74, %c0_75, %c0_76] : memref<5x2x96x128xbf16, #tpu.memory_space<vmem>>, vector<1x1x96x128xbf16>
    %55 = vector.shape_cast %54 : vector<1x1x96x128xbf16> to vector<96x128xbf16>
    %cst_77 = arith.constant dense<0.000000e+00> : vector<16x128xf32>
    %56 = tpu.matmul %5, %55, %cst_77 {dimension_numbers = #tpu.dot_dimension_numbers<[1], [0], [0], [1], [0, 0, 1, 1], [], []>} : vector<16x96xbf16>, vector<96x128xbf16>, vector<16x128xf32> -> vector<16x128xf32>
    %57 = arith.addf %53, %56 : vector<16x128xf32>
    %c2_78 = arith.constant 2 : index
    %c0_79 = arith.constant 0 : index
    %c0_80 = arith.constant 0 : index
    %c0_81 = arith.constant 0 : index
    %58 = vector.load %arg2[%c2_78, %c0_79, %c0_80, %c0_81] : memref<5x2x96x128xbf16, #tpu.memory_space<vmem>>, vector<1x1x96x128xbf16>
    %59 = vector.shape_cast %58 : vector<1x1x96x128xbf16> to vector<96x128xbf16>
    %cst_82 = arith.constant dense<0.000000e+00> : vector<16x128xf32>
    %60 = tpu.matmul %7, %59, %cst_82 {dimension_numbers = #tpu.dot_dimension_numbers<[1], [0], [0], [1], [0, 0, 1, 1], [], []>} : vector<16x96xbf16>, vector<96x128xbf16>, vector<16x128xf32> -> vector<16x128xf32>
    %61 = arith.addf %57, %60 : vector<16x128xf32>
    %c3_83 = arith.constant 3 : index
    %c0_84 = arith.constant 0 : index
    %c0_85 = arith.constant 0 : index
    %c0_86 = arith.constant 0 : index
    %62 = vector.load %arg2[%c3_83, %c0_84, %c0_85, %c0_86] : memref<5x2x96x128xbf16, #tpu.memory_space<vmem>>, vector<1x1x96x128xbf16>
    %63 = vector.shape_cast %62 : vector<1x1x96x128xbf16> to vector<96x128xbf16>
    %cst_87 = arith.constant dense<0.000000e+00> : vector<16x128xf32>
    %64 = tpu.matmul %9, %63, %cst_87 {dimension_numbers = #tpu.dot_dimension_numbers<[1], [0], [0], [1], [0, 0, 1, 1], [], []>} : vector<16x96xbf16>, vector<96x128xbf16>, vector<16x128xf32> -> vector<16x128xf32>
    %65 = arith.addf %61, %64 : vector<16x128xf32>
    %c4_88 = arith.constant 4 : index
    %c0_89 = arith.constant 0 : index
    %c0_90 = arith.constant 0 : index
    %c0_91 = arith.constant 0 : index
    %66 = vector.load %arg2[%c4_88, %c0_89, %c0_90, %c0_91] : memref<5x2x96x128xbf16, #tpu.memory_space<vmem>>, vector<1x1x96x128xbf16>
    %67 = vector.shape_cast %66 : vector<1x1x96x128xbf16> to vector<96x128xbf16>
    %cst_92 = arith.constant dense<0.000000e+00> : vector<16x128xf32>
    %68 = tpu.matmul %11, %67, %cst_92 {dimension_numbers = #tpu.dot_dimension_numbers<[1], [0], [0], [1], [0, 0, 1, 1], [], []>} : vector<16x96xbf16>, vector<96x128xbf16>, vector<16x128xf32> -> vector<16x128xf32>
    %69 = arith.addf %65, %68 : vector<16x128xf32>
    %70 = arith.maximumf %50, %69 : vector<16x128xf32>
    %c0_93 = arith.constant 0 : index
    %c1_94 = arith.constant 1 : index
    %c0_95 = arith.constant 0 : index
    %c0_96 = arith.constant 0 : index
    %71 = vector.load %arg2[%c0_93, %c1_94, %c0_95, %c0_96] : memref<5x2x96x128xbf16, #tpu.memory_space<vmem>>, vector<1x1x96x128xbf16>
    %72 = vector.shape_cast %71 : vector<1x1x96x128xbf16> to vector<96x128xbf16>
    %cst_97 = arith.constant dense<0.000000e+00> : vector<16x128xf32>
    %73 = tpu.matmul %3, %72, %cst_97 {dimension_numbers = #tpu.dot_dimension_numbers<[1], [0], [0], [1], [0, 0, 1, 1], [], []>} : vector<16x96xbf16>, vector<96x128xbf16>, vector<16x128xf32> -> vector<16x128xf32>
    %c1_98 = arith.constant 1 : index
    %c1_99 = arith.constant 1 : index
    %c0_100 = arith.constant 0 : index
    %c0_101 = arith.constant 0 : index
    %74 = vector.load %arg2[%c1_98, %c1_99, %c0_100, %c0_101] : memref<5x2x96x128xbf16, #tpu.memory_space<vmem>>, vector<1x1x96x128xbf16>
    %75 = vector.shape_cast %74 : vector<1x1x96x128xbf16> to vector<96x128xbf16>
    %cst_102 = arith.constant dense<0.000000e+00> : vector<16x128xf32>
    %76 = tpu.matmul %5, %75, %cst_102 {dimension_numbers = #tpu.dot_dimension_numbers<[1], [0], [0], [1], [0, 0, 1, 1], [], []>} : vector<16x96xbf16>, vector<96x128xbf16>, vector<16x128xf32> -> vector<16x128xf32>
    %77 = arith.addf %73, %76 : vector<16x128xf32>
    %c2_103 = arith.constant 2 : index
    %c1_104 = arith.constant 1 : index
    %c0_105 = arith.constant 0 : index
    %c0_106 = arith.constant 0 : index
    %78 = vector.load %arg2[%c2_103, %c1_104, %c0_105, %c0_106] : memref<5x2x96x128xbf16, #tpu.memory_space<vmem>>, vector<1x1x96x128xbf16>
    %79 = vector.shape_cast %78 : vector<1x1x96x128xbf16> to vector<96x128xbf16>
    %cst_107 = arith.constant dense<0.000000e+00> : vector<16x128xf32>
    %80 = tpu.matmul %7, %79, %cst_107 {dimension_numbers = #tpu.dot_dimension_numbers<[1], [0], [0], [1], [0, 0, 1, 1], [], []>} : vector<16x96xbf16>, vector<96x128xbf16>, vector<16x128xf32> -> vector<16x128xf32>
    %81 = arith.addf %77, %80 : vector<16x128xf32>
    %c3_108 = arith.constant 3 : index
    %c1_109 = arith.constant 1 : index
    %c0_110 = arith.constant 0 : index
    %c0_111 = arith.constant 0 : index
    %82 = vector.load %arg2[%c3_108, %c1_109, %c0_110, %c0_111] : memref<5x2x96x128xbf16, #tpu.memory_space<vmem>>, vector<1x1x96x128xbf16>
    %83 = vector.shape_cast %82 : vector<1x1x96x128xbf16> to vector<96x128xbf16>
    %cst_112 = arith.constant dense<0.000000e+00> : vector<16x128xf32>
    %84 = tpu.matmul %9, %83, %cst_112 {dimension_numbers = #tpu.dot_dimension_numbers<[1], [0], [0], [1], [0, 0, 1, 1], [], []>} : vector<16x96xbf16>, vector<96x128xbf16>, vector<16x128xf32> -> vector<16x128xf32>
    %85 = arith.addf %81, %84 : vector<16x128xf32>
    %c4_113 = arith.constant 4 : index
    %c1_114 = arith.constant 1 : index
    %c0_115 = arith.constant 0 : index
    %c0_116 = arith.constant 0 : index
    %86 = vector.load %arg2[%c4_113, %c1_114, %c0_115, %c0_116] : memref<5x2x96x128xbf16, #tpu.memory_space<vmem>>, vector<1x1x96x128xbf16>
    %87 = vector.shape_cast %86 : vector<1x1x96x128xbf16> to vector<96x128xbf16>
    %cst_117 = arith.constant dense<0.000000e+00> : vector<16x128xf32>
    %88 = tpu.matmul %11, %87, %cst_117 {dimension_numbers = #tpu.dot_dimension_numbers<[1], [0], [0], [1], [0, 0, 1, 1], [], []>} : vector<16x96xbf16>, vector<96x128xbf16>, vector<16x128xf32> -> vector<16x128xf32>
    %89 = arith.addf %85, %88 : vector<16x128xf32>
    %90 = arith.maximumf %70, %89 : vector<16x128xf32>
    %c0_118 = arith.constant 0 : index
    %c0_119 = arith.constant 0 : index
    %91 = vector.load %arg3[%c0_118, %c0_119] : memref<1x128xf32, #tpu.memory_space<vmem>>, vector<1x128xf32>
    %92 = vector.broadcast %91 : vector<1x128xf32> to vector<16x128xf32>
    %93 = arith.addf %90, %92 : vector<16x128xf32>
    %cst_120 = arith.constant 0.00999999977 : f32
    %94 = vector.broadcast %cst_120 : f32 to vector<16x128xf32>
    %95 = arith.mulf %94, %93 : vector<16x128xf32>
    %96 = arith.maximumf %93, %95 : vector<16x128xf32>
    %97 = arith.truncf %96 : vector<16x128xf32> to vector<16x128xbf16>
    %c0_121 = arith.constant 0 : index
    %c0_122 = arith.constant 0 : index
    %98 = vector.load %arg4[%c0_121, %c0_122] : memref<16x128xbf16, #tpu.memory_space<vmem>>, vector<16x128xbf16>
    tpu.vector_store %arg4[%c0_121, %c0_122], %97 {strides = array<i32>} : memref<16x128xbf16, #tpu.memory_space<vmem>>, vector<16x128xbf16>,
    return
  }
  func.func @transform_0(%arg0: i32) -> (i32, i32, i32, i32) {
    %c0_i32 = arith.constant 0 : i32
    %c0_i32_0 = arith.constant 0 : i32
    %c0_i32_1 = arith.constant 0 : i32
    %c0_i32_2 = arith.constant 0 : i32
    return %c0_i32, %c0_i32_0, %arg0, %c0_i32_1 : i32, i32, i32, i32
  }
  func.func @transform_1(%arg0: i32) -> (i32, i32, i32, i32) {
    %c0_i32 = arith.constant 0 : i32
    %c0_i32_0 = arith.constant 0 : i32
    %c0_i32_1 = arith.constant 0 : i32
    %c0_i32_2 = arith.constant 0 : i32
    %c0_i32_3 = arith.constant 0 : i32
    return %c0_i32, %c0_i32_0, %c0_i32_1, %c0_i32_2 : i32, i32, i32, i32
  }
  func.func @transform_2(%arg0: i32) -> (i32, i32) {
    %c0_i32 = arith.constant 0 : i32
    %c0_i32_0 = arith.constant 0 : i32
    %c0_i32_1 = arith.constant 0 : i32
    return %c0_i32, %c0_i32_0 : i32, i32
  }
  func.func @transform_3(%arg0: i32) -> (i32, i32) {
    %c0_i32 = arith.constant 0 : i32
    %c0_i32_0 = arith.constant 0 : i32
    return %arg0, %c0_i32 : i32, i32
  }
}

module attributes {stable_mosaic.version = 11 : i64} {
  func.func @_tail_kernel(%arg0: i32, %arg1: memref<2x324xbf16, #tpu.memory_space<vmem>>, %arg2: memref<324x54xbf16, #tpu.memory_space<vmem>>, %arg3: memref<1x54xf32, #tpu.memory_space<vmem>>, %arg4: memref<54x128xbf16, #tpu.memory_space<vmem>>, %arg5: memref<1x128xf32, #tpu.memory_space<vmem>>, %arg6: memref<128x128xbf16, #tpu.memory_space<vmem>>, %arg7: memref<1x128xf32, #tpu.memory_space<vmem>>, %arg8: memref<2x128xf32, #tpu.memory_space<vmem>>) attributes {dimension_semantics = [#tpu.dimension_semantics<parallel>], iteration_bounds = array<i64: 1>, scalar_prefetch = 0 : i64, scratch_operands = 0 : i64, tpu.core_type = #tpu.core_type<tc>, window_params = [{transform_indices = @transform_0, window_bounds = array<i64: 2, 324>}, {pipeline_mode = #tpu.pipeline_mode<synchronous>, transform_indices = @transform_1, window_bounds = array<i64: 324, 54>}, {pipeline_mode = #tpu.pipeline_mode<synchronous>, transform_indices = @transform_2, window_bounds = array<i64: 1, 54>}, {pipeline_mode = #tpu.pipeline_mode<synchronous>, transform_indices = @transform_3, window_bounds = array<i64: 54, 128>}, {pipeline_mode = #tpu.pipeline_mode<synchronous>, transform_indices = @transform_4, window_bounds = array<i64: 1, 128>}, {pipeline_mode = #tpu.pipeline_mode<synchronous>, transform_indices = @transform_5, window_bounds = array<i64: 128, 128>}, {pipeline_mode = #tpu.pipeline_mode<synchronous>, transform_indices = @transform_6, window_bounds = array<i64: 1, 128>}, {transform_indices = @transform_7, window_bounds = array<i64: 2, 128>}]} {
    %c0 = arith.constant 0 : index
    %c0_0 = arith.constant 0 : index
    %0 = vector.load %arg1[%c0, %c0_0] : memref<2x324xbf16, #tpu.memory_space<vmem>>, vector<2x324xbf16>
    %c0_1 = arith.constant 0 : index
    %c0_2 = arith.constant 0 : index
    %1 = vector.load %arg2[%c0_1, %c0_2] : memref<324x54xbf16, #tpu.memory_space<vmem>>, vector<324x54xbf16>
    %cst = arith.constant dense<0.000000e+00> : vector<2x54xf32>
    %2 = tpu.matmul %0, %1, %cst {dimension_numbers = #tpu.dot_dimension_numbers<[1], [0], [0], [1], [0, 0, 1, 1], [], []>} : vector<2x324xbf16>, vector<324x54xbf16>, vector<2x54xf32> -> vector<2x54xf32>
    %c0_3 = arith.constant 0 : index
    %c0_4 = arith.constant 0 : index
    %3 = vector.load %arg3[%c0_3, %c0_4] : memref<1x54xf32, #tpu.memory_space<vmem>>, vector<1x54xf32>
    %4 = vector.broadcast %3 : vector<1x54xf32> to vector<2x54xf32>
    %5 = arith.addf %2, %4 : vector<2x54xf32>
    %cst_5 = arith.constant 0.00999999977 : f32
    %6 = vector.broadcast %cst_5 : f32 to vector<2x54xf32>
    %7 = arith.mulf %6, %5 : vector<2x54xf32>
    %8 = arith.maximumf %5, %7 : vector<2x54xf32>
    %9 = arith.truncf %8 : vector<2x54xf32> to vector<2x54xbf16>
    %c0_6 = arith.constant 0 : index
    %c0_7 = arith.constant 0 : index
    %10 = vector.load %arg4[%c0_6, %c0_7] : memref<54x128xbf16, #tpu.memory_space<vmem>>, vector<54x128xbf16>
    %cst_8 = arith.constant dense<0.000000e+00> : vector<2x128xf32>
    %11 = tpu.matmul %9, %10, %cst_8 {dimension_numbers = #tpu.dot_dimension_numbers<[1], [0], [0], [1], [0, 0, 1, 1], [], []>} : vector<2x54xbf16>, vector<54x128xbf16>, vector<2x128xf32> -> vector<2x128xf32>
    %c0_9 = arith.constant 0 : index
    %c0_10 = arith.constant 0 : index
    %12 = vector.load %arg5[%c0_9, %c0_10] : memref<1x128xf32, #tpu.memory_space<vmem>>, vector<1x128xf32>
    %13 = vector.broadcast %12 : vector<1x128xf32> to vector<2x128xf32>
    %14 = arith.addf %11, %13 : vector<2x128xf32>
    %cst_11 = arith.constant 0.00999999977 : f32
    %15 = vector.broadcast %cst_11 : f32 to vector<2x128xf32>
    %16 = arith.mulf %15, %14 : vector<2x128xf32>
    %17 = arith.maximumf %14, %16 : vector<2x128xf32>
    %18 = arith.truncf %17 : vector<2x128xf32> to vector<2x128xbf16>
    %c0_12 = arith.constant 0 : index
    %c0_13 = arith.constant 0 : index
    %19 = vector.load %arg6[%c0_12, %c0_13] : memref<128x128xbf16, #tpu.memory_space<vmem>>, vector<128x128xbf16>
    %cst_14 = arith.constant dense<0.000000e+00> : vector<2x128xf32>
    %20 = tpu.matmul %18, %19, %cst_14 {dimension_numbers = #tpu.dot_dimension_numbers<[1], [0], [0], [1], [0, 0, 1, 1], [], []>} : vector<2x128xbf16>, vector<128x128xbf16>, vector<2x128xf32> -> vector<2x128xf32>
    %c0_15 = arith.constant 0 : index
    %c0_16 = arith.constant 0 : index
    %21 = vector.load %arg7[%c0_15, %c0_16] : memref<1x128xf32, #tpu.memory_space<vmem>>, vector<1x128xf32>
    %22 = vector.broadcast %21 : vector<1x128xf32> to vector<2x128xf32>
    %23 = arith.addf %20, %22 : vector<2x128xf32>
    %c0_17 = arith.constant 0 : index
    %c0_18 = arith.constant 0 : index
    %24 = vector.load %arg8[%c0_17, %c0_18] : memref<2x128xf32, #tpu.memory_space<vmem>>, vector<2x128xf32>
    tpu.vector_store %arg8[%c0_17, %c0_18], %23 {strides = array<i32>} : memref<2x128xf32, #tpu.memory_space<vmem>>, vector<2x128xf32>,
    return
  }
  func.func @transform_0(%arg0: i32) -> (i32, i32) {
    %c0_i32 = arith.constant 0 : i32
    %c0_i32_0 = arith.constant 0 : i32
    return %arg0, %c0_i32 : i32, i32
  }
  func.func @transform_1(%arg0: i32) -> (i32, i32) {
    %c0_i32 = arith.constant 0 : i32
    %c0_i32_0 = arith.constant 0 : i32
    %c0_i32_1 = arith.constant 0 : i32
    return %c0_i32, %c0_i32_0 : i32, i32
  }
  func.func @transform_2(%arg0: i32) -> (i32, i32) {
    %c0_i32 = arith.constant 0 : i32
    %c0_i32_0 = arith.constant 0 : i32
    %c0_i32_1 = arith.constant 0 : i32
    return %c0_i32, %c0_i32_0 : i32, i32
  }
  func.func @transform_3(%arg0: i32) -> (i32, i32) {
    %c0_i32 = arith.constant 0 : i32
    %c0_i32_0 = arith.constant 0 : i32
    %c0_i32_1 = arith.constant 0 : i32
    return %c0_i32, %c0_i32_0 : i32, i32
  }
  func.func @transform_4(%arg0: i32) -> (i32, i32) {
    %c0_i32 = arith.constant 0 : i32
    %c0_i32_0 = arith.constant 0 : i32
    %c0_i32_1 = arith.constant 0 : i32
    return %c0_i32, %c0_i32_0 : i32, i32
  }
  func.func @transform_5(%arg0: i32) -> (i32, i32) {
    %c0_i32 = arith.constant 0 : i32
    %c0_i32_0 = arith.constant 0 : i32
    %c0_i32_1 = arith.constant 0 : i32
    return %c0_i32, %c0_i32_0 : i32, i32
  }
  func.func @transform_6(%arg0: i32) -> (i32, i32) {
    %c0_i32 = arith.constant 0 : i32
    %c0_i32_0 = arith.constant 0 : i32
    %c0_i32_1 = arith.constant 0 : i32
    return %c0_i32, %c0_i32_0 : i32, i32
  }
  func.func @transform_7(%arg0: i32) -> (i32, i32) {
    %c0_i32 = arith.constant 0 : i32
    %c0_i32_0 = arith.constant 0 : i32
    return %arg0, %c0_i32 : i32, i32
  }
}

</mosaic_0001>

<bundles_post_ra>
// kernel: cnn2_forward.3
= control target key start
LH: loop header
LB: loop body
LE: loop exit
PB: predicated region body
PF: predicated region fallthrough
CT: control target
= control target key end

     0   :  { %vm117_vm0 = vcmask 1041408   ;;  %vm110_vm1 = vcmask 687104   ;;  %vm1696_vm2 = vcmask 781312   ;;  %s3378_s1 = inlined_call_operand.vmem [shape: bf16[5,2,84,96], index: 1, kind: input, shape index: {}]   ;;  %s3379_s0 = inlined_call_operand.vmem [shape: bf16[2,3,32,84], index: 0, kind: input, shape index: {}]   ;;  %s3380_s2 = inlined_call_operand.vmem [shape: f32[1,96], index: 2, kind: input, shape index: {}]   ;;  %s3381_s3 = inlined_call_operand.vmem [shape: bf16[32,96], index: 3, kind: output, shape index: {}]  }
   0x1   :  { %v2540_v0 = vld [vmem:[%s3378_s1 + $0x80] ss:$0 sps:$4 sm:$0x33]   ;;  %v2545_v1 = vld [vmem:[%s3378_s1 + $0x78] sm:$0xff]   ;;  %v2566_v5 = vld [vmem:[%s3378_s1 + $0x70] sm:$0xff]  }
   0x2   :  { %v2550_v2 = vld [vmem:[%s3378_s1 + $0x28] ss:$0 sps:$4 sm:$0x33]   ;;  %v2555_v3 = vld [vmem:[%s3378_s1 + $0x20] sm:$0xff]   ;;  %2425 = vmatprep.subr.msk.bf16.mxu0 %vm117_vm0, %v2540_v0  ;;  %v2561_v4 = vsel %vm117_vm0, %v2540_v0, 0  ;;  %v2578_v7 = vld [vmem:[%s3378_s1 + $0x18] sm:$0xff]  }
   0x3   :  { %2426 = vmatprep.subr.msk.bf16.mxu1 %vm117_vm0, %v2550_v2  ;;  %2106 = vmatpush3.bf16.msra.mxu0 %v2561_v4  ;;  %v2573_v6 = vsel %vm117_vm0, %v2550_v2, 0  ;;  %v2589_v8 = vld [vmem:[%s3378_s1 + $0x68] sm:$0xff]   ;;  %v2595_v9 = vld [vmem:[%s3378_s1 + $0x10] sm:$0xff]   ;;  %v2600_v10 = vld [vmem:[%s3378_s1 + $0x60] sm:$0xff]  }
   0x4   :  { %2122 = vmatpush3.bf16.msra.mxu1 %v2573_v6  ;;  %2107 = vmatprep.subr.bf16.mxu0 %v2545_v1  ;;  %v2606_v11 = vld [vmem:[%s3378_s1 + $0x8] sm:$0xff]   ;;  %v2613_v12 = vld [vmem:[%s3379_s0 + $0x30] sm:$0xff]   ;;  %v2619_v13 = vld [vmem:[%s3379_s0] sm:$0xff]  }
   0x5   :  { %2123 = vmatprep.subr.bf16.mxu1 %v2555_v3  ;;  %2117 = vmatprep.mubr.msk.bf16.mxu0 %vm110_vm1, %v2613_v12  ;;  %v2631_v14 = vld [vmem:[%s3378_s1 + $0x58] sm:$0xff]   ;;  %v2637_v15 = vld [vmem:[%s3378_s1] sm:$0xff]   ;;  %v2648_v17 = vld [vmem:[%s3378_s1 + $0x130] ss:$0 sps:$4 sm:$0x33]  }
   0x6   :  { %2133 = vmatprep.mubr.msk.bf16.mxu1 %vm110_vm1, %v2619_v13  ;;  %v2642_v16 = vld [vmem:[%s3378_s1 + $0xd8] ss:$0 sps:$4 sm:$0x33]   ;;  %v2662_v19 = vld [vmem:[%s3379_s0 + $0x8] sm:$0xff]   ;;  %v2674_v21 = vld [vmem:[%s3378_s1 + $0xd0] sm:$0xff]   ;;  %v2680_v22 = vsel %vm117_vm0, %v2648_v17, 0 }
   0x7   :  { %2108 = vmatpush3.bf16.msra.mxu0 %v2545_v1  ;;  %v2656_v18 = vld [vmem:[%s3379_s0 + $0x38] sm:$0xff]   ;;  %v2669_v20 = vsel %vm117_vm0, %v2642_v16, 0  ;;  %v2685_v23 = vld [vmem:[%s3378_s1 + $0x128] sm:$0xff]   ;;  %v2700_v25 = vld [vmem:[%s3379_s0 + $0x10] sm:$0xff]  }
   0x8   :  { %2124 = vmatpush3.bf16.msra.mxu1 %v2555_v3  ;;  %2109 = vmatprep.subr.bf16.mxu0 %v2566_v5  ;;  %v2692_v24 = vld [vmem:[%s3378_s1 + $0xc8] sm:$0xff]   ;;  %v2707_v26 = vld [vmem:[%s3379_s0 + $0x40] sm:$0xff]   ;;  %v2731_v29 = vld [vmem:[%s3378_s1 + $0x118] sm:$0xff]  }
   0x9   :  { %2125 = vmatprep.subr.bf16.mxu1 %v2578_v7  ;;  %v2713_v27 = vld [vmem:[%s3378_s1 + $0x120] sm:$0xff]   ;;  %v2739_v30 = vld [vmem:[%s3378_s1 + $0xb8] sm:$0xff]   ;;  %v2745_v31 = vld [vmem:[%s3378_s1 + $0x110] sm:$0xff]  }
   0xa   :  { %v2725_v28 = vld [vmem:[%s3378_s1 + $0xc0] sm:$0xff]   ;;  %v2753_v32 = vld [vmem:[%s3378_s1 + $0xb0] sm:$0xff]   ;;  %v2758_v33 = vld [vmem:[%s3378_s1 + $0x188] ss:$0 sps:$4 sm:$0x33]  }
   0xb   :  { %2110 = vmatpush3.bf16.msra.mxu0 %v2566_v5  ;;  %v2764_v34 = vld [vmem:[%s3378_s1 + $0x108] sm:$0xff]   ;;  %v2778_v36 = vld [vmem:[%s3379_s0 + $0x18] sm:$0xff]   ;;  %v2787_v38 = vsel %vm117_vm0, %v2758_v33, 0  ;;  %v2792_v39 = vld [vmem:[%s3378_s1 + $0x180] sm:$0xff]  }
   0xc   :  { %2126 = vmatpush3.bf16.msra.mxu1 %v2578_v7  ;;  %2111 = vmatprep.subr.bf16.mxu0 %v2589_v8  ;;  %v2769_v35 = vld [vmem:[%s3378_s1 + $0xac] ss:$0 sps:$4 sm:$0x33]   ;;  %v2802_v41 = vld [vmem:[%s3378_s1 + $0xa4] sm:$0xff]   ;;  %v2824_v43 = vld [vmem:[%s3378_s1 + $0x178] sm:$0xff]  }
   0xd   :  { %2127 = vmatprep.subr.bf16.mxu1 %v2595_v9  ;;  %v2783_v37 = vld [vmem:[%s3379_s0 + $0x48] sm:$0xff]   ;;  %v2797_v40 = vsel %vm117_vm0, %v2769_v35, 0  ;;  %v2807_v42 = vld [vmem:[%s3379_s0 + $0x20] sm:$0xff]   ;;  %v2842_v45 = vld [vmem:[%s3378_s1 + $0x170] sm:$0xff]  }
   0xe   :  { %v2830_v44 = vld [vmem:[%s3378_s1 + $0x9c] sm:$0xff]   ;;  %v2848_v46 = vld [vmem:[%s3378_s1 + $0x94] sm:$0xff]   ;;  %v2856_v47 = vld [vmem:[%s3378_s1 + $0x168] sm:$0xff]  }
   0xf   :  { %2112 = vmatpush3.bf16.msra.mxu0 %v2589_v8  ;;  %v2862_v48 = vld [vmem:[%s3378_s1 + $0x8c] sm:$0xff]   ;;  %v2870_v49 = vld [vmem:[%s3378_s1 + $0x160] sm:$0xff]   ;;  %v2884_v51 = vld [vmem:[%s3378_s1 + $0x54] ss:$0 sps:$4 sm:$0x33]  }
  0x10   :  { %2128 = vmatpush3.bf16.msra.mxu1 %v2595_v9  ;;  %2113 = vmatprep.subr.bf16.mxu0 %v2600_v10  ;;  %v2876_v50 = vld [vmem:[%s3378_s1 + $0x84] sm:$0xff]   ;;  %v2903_v54 = vsel %vm117_vm0, %v2884_v51, 0  ;;  %v2908_v55 = vld [vmem:[%s3378_s1 + $0x4c] sm:$0xff]   ;;  %v2919_v57 = vld [vmem:[%s3378_s1 + $0xfc] sm:$0xff]  }
  0x11   :  { %2129 = vmatprep.subr.bf16.mxu1 %v2606_v11  ;;  %v2890_v52 = vld [vmem:[%s3378_s1 + $0x104] ss:$0 sps:$4 sm:$0x33]   ;;  %v2895_v53 = vld [vmem:[%s3379_s0 + $0x28] sm:$0xff]   ;;  %v2937_v59 = vld [vmem:[%s3378_s1 + $0xf4] sm:$0xff]  }
  0x12   :  { %v2914_v56 = vsel %vm117_vm0, %v2890_v52, 0  ;;  %v2931_v58 = vld [vmem:[%s3378_s1 + $0x44] sm:$0xff]   ;;  %3407 = vst [vmem:[#allocation2_spill] sm:$0xff] %v2937_v59  ;;  %v2949_v60 = vld [vmem:[%s3378_s1 + $0x3c] sm:$0xff]   ;;  %v2955_v61 = vld [vmem:[%s3378_s1 + $0xec] sm:$0xff]  }
  0x13   :  { %2114 = vmatpush3.bf16.msra.mxu0 %v2600_v10  ;;  %3408 = vst [vmem:[#allocation3_spill] sm:$0xff] %v2949_v60  ;;  %3409 = vst [vmem:[#allocation4_spill] sm:$0xff] %v2955_v61  ;;  %v2963_v62 = vld [vmem:[%s3378_s1 + $0x34] sm:$0xff]   ;;  %v2969_v63 = vld [vmem:[%s3378_s1 + $0xe4] sm:$0xff]  }
  0x14   :  { %2130 = vmatpush3.bf16.msra.mxu1 %v2606_v11  ;;  %2115 = vmatprep.subr.bf16.mxu0 %v2631_v14  ;;  %3410 = vst [vmem:[#allocation5_spill] sm:$0xff] %v2963_v62  ;;  %3411 = vst [vmem:[#allocation6_spill] sm:$0xff] %v2969_v63 }
  0x15   :  { %2131 = vmatprep.subr.bf16.mxu1 %v2637_v15 }
  0x17   :  { %2116 = vmatpush3.bf16.msra.mxu0 %v2631_v14 }
  0x18   :  { %2132 = vmatpush3.bf16.msra.mxu1 %v2637_v15  ;;  %2427 = vmatprep.subr.msk.bf16.mxu0 %vm117_vm0, %v2642_v16 }
  0x19   :  { %2428 = vmatprep.subr.msk.bf16.mxu1 %vm117_vm0, %v2648_v17 }
  0x1a   :  { %2118 = vmatmul.mubr.msk.bf16.vlgmr.msra.gmra.mxu0 %vm110_vm1, %v2656_v18 }
  0x1b   :  { %2134 = vmatmul.mubr.msk.bf16.vlgmr.msra.gmra.mxu1 %vm110_vm1, %v2662_v19  ;;  %2138 = vmatpush3.bf16.msra.mxu0 %v2669_v20 }
  0x1c   :  { %2154 = vmatpush3.bf16.msra.mxu1 %v2680_v22  ;;  %2139 = vmatprep.subr.bf16.mxu0 %v2674_v21 }
  0x1d   :  { %2155 = vmatprep.subr.bf16.mxu1 %v2685_v23  ;;  %2149 = vmatprep.mubr.msk.bf16.mxu0 %vm110_vm1, %v2700_v25 }
  0x1e   :  { %2165 = vmatprep.mubr.msk.bf16.mxu1 %vm110_vm1, %v2707_v26 }
  0x1f   :  { %2140 = vmatpush3.bf16.msra.mxu0 %v2674_v21 }
  0x20   :  { %2156 = vmatpush3.bf16.msra.mxu1 %v2685_v23  ;;  %2141 = vmatprep.subr.bf16.mxu0 %v2692_v24 }
  0x21   :  { %2157 = vmatprep.subr.bf16.mxu1 %v2713_v27 }
  0x23   :  { %2142 = vmatpush3.bf16.msra.mxu0 %v2692_v24 }
  0x24   :  { %2158 = vmatpush3.bf16.msra.mxu1 %v2713_v27  ;;  %2143 = vmatprep.subr.bf16.mxu0 %v2725_v28 }
  0x25   :  { %2159 = vmatprep.subr.bf16.mxu1 %v2731_v29 }
  0x27   :  { %2144 = vmatpush3.bf16.msra.mxu0 %v2725_v28 }
  0x28   :  { %2160 = vmatpush3.bf16.msra.mxu1 %v2731_v29  ;;  %2145 = vmatprep.subr.bf16.mxu0 %v2739_v30 }
  0x29   :  { %2161 = vmatprep.subr.bf16.mxu1 %v2745_v31 }
  0x2b   :  { %2146 = vmatpush3.bf16.msra.mxu0 %v2739_v30 }
  0x2c   :  { %2162 = vmatpush3.bf16.msra.mxu1 %v2745_v31  ;;  %2147 = vmatprep.subr.bf16.mxu0 %v2753_v32 }
  0x2d   :  { %2163 = vmatprep.subr.bf16.mxu1 %v2764_v34 }
  0x2f   :  { %2148 = vmatpush3.bf16.msra.mxu0 %v2753_v32 }
  0x30   :  { %2164 = vmatpush3.bf16.msra.mxu1 %v2764_v34  ;;  %2429 = vmatprep.subr.msk.bf16.mxu0 %vm117_vm0, %v2758_v33 }
  0x31   :  { %2430 = vmatprep.subr.msk.bf16.mxu1 %vm117_vm0, %v2769_v35 }
  0x32   :  { %2150 = vmatmul.mubr.msk.bf16.vlgmr.msra.gmra.mxu0 %vm110_vm1, %v2778_v36 }
  0x33   :  { %2166 = vmatmul.mubr.msk.bf16.vlgmr.msra.gmra.mxu1 %vm110_vm1, %v2783_v37  ;;  %2170 = vmatpush3.bf16.msra.mxu0 %v2787_v38 }
  0x34   :  { %2186 = vmatpush3.bf16.msra.mxu1 %v2797_v40  ;;  %2171 = vmatprep.subr.bf16.mxu0 %v2792_v39 }
  0x35   :  { %2187 = vmatprep.subr.bf16.mxu1 %v2802_v41  ;;  %2181 = vmatprep.mubr.msk.bf16.mxu0 %vm110_vm1, %v2807_v42 }
  0x36   :  { %2197 = vmatprep.mubr.msk.bf16.mxu1 %vm110_vm1, %v2613_v12 }
  0x37   :  { %2172 = vmatpush3.bf16.msra.mxu0 %v2792_v39 }
  0x38   :  { %2188 = vmatpush3.bf16.msra.mxu1 %v2802_v41  ;;  %2173 = vmatprep.subr.bf16.mxu0 %v2824_v43 }
  0x39   :  { %2189 = vmatprep.subr.bf16.mxu1 %v2830_v44 }
  0x3b   :  { %2174 = vmatpush3.bf16.msra.mxu0 %v2824_v43 }
  0x3c   :  { %2190 = vmatpush3.bf16.msra.mxu1 %v2830_v44  ;;  %2175 = vmatprep.subr.bf16.mxu0 %v2842_v45 }
  0x3d   :  { %2191 = vmatprep.subr.bf16.mxu1 %v2848_v46 }
  0x3f   :  { %2176 = vmatpush3.bf16.msra.mxu0 %v2842_v45 }
  0x40   :  { %2192 = vmatpush3.bf16.msra.mxu1 %v2848_v46  ;;  %2177 = vmatprep.subr.bf16.mxu0 %v2856_v47 }
  0x41   :  { %2193 = vmatprep.subr.bf16.mxu1 %v2862_v48 }
  0x43   :  { %2178 = vmatpush3.bf16.msra.mxu0 %v2856_v47 }
  0x44   :  { %2194 = vmatpush3.bf16.msra.mxu1 %v2862_v48  ;;  %2179 = vmatprep.subr.bf16.mxu0 %v2870_v49 }
  0x45   :  { %2195 = vmatprep.subr.bf16.mxu1 %v2876_v50 }
  0x47   :  { %2180 = vmatpush3.bf16.msra.mxu0 %v2870_v49 }
  0x48   :  { %2196 = vmatpush3.bf16.msra.mxu1 %v2876_v50  ;;  %2431 = vmatprep.subr.msk.bf16.mxu0 %vm117_vm0, %v2884_v51 }
  0x49   :  { %2432 = vmatprep.subr.msk.bf16.mxu1 %vm117_vm0, %v2890_v52 }
  0x4a   :  { %2182 = vmatmul.mubr.msk.bf16.vlgmr.msra.gmra.mxu0 %vm110_vm1, %v2895_v53 }
  0x4b   :  { %2198 = vmatmul.mubr.msk.bf16.vlgmr.msra.gmra.mxu1 %vm110_vm1, %v2656_v18  ;;  %2202 = vmatpush3.bf16.msra.mxu0 %v2903_v54 }
  0x4c   :  { %2218 = vmatpush3.bf16.msra.mxu1 %v2914_v56  ;;  %2203 = vmatprep.subr.bf16.mxu0 %v2908_v55 }
  0x4d   :  { %2219 = vmatprep.subr.bf16.mxu1 %v2919_v57  ;;  %2213 = vmatprep.mubr.msk.bf16.mxu0 %vm110_vm1, %v2619_v13  ;;  %v2977_v13 = vld [vmem:[%s3378_s1 + $0x2c] sm:$0xff]  }
  0x4e   :  { %2229 = vmatprep.mubr.msk.bf16.mxu1 %vm110_vm1, %v2700_v25  ;;  %3412 = vst [vmem:[#allocation7_spill] sm:$0xff] %v2977_v13 }
  0x4f   :  { %2204 = vmatpush3.bf16.msra.mxu0 %v2908_v55 }
  0x50   :  { %2220 = vmatpush3.bf16.msra.mxu1 %v2919_v57  ;;  %2205 = vmatprep.subr.bf16.mxu0 %v2931_v58 }
  0x51   :  { %2221 = vmatprep.subr.bf16.mxu1 %v2937_v59 }
  0x53   :  { %2206 = vmatpush3.bf16.msra.mxu0 %v2931_v58 }
  0x54   :  { %2222 = vmatpush3.bf16.msra.mxu1 %v2937_v59  ;;  %2207 = vmatprep.subr.bf16.mxu0 %v2949_v60  ;;  %v2983_v59 = vld [vmem:[%s3378_s1 + $0xdc] sm:$0xff]  }
  0x55   :  { %2223 = vmatprep.subr.bf16.mxu1 %v2955_v61  ;;  %3413 = vst [vmem:[#allocation8_spill] sm:$0xff] %v2983_v59 }
  0x57   :  { %2208 = vmatpush3.bf16.msra.mxu0 %v2949_v60  ;;  %v2997_v60 = vld [vmem:[%s3378_s1 + $0x1b4] ss:$0 sps:$4 sm:$0x33]  }
  0x58   :  { %2224 = vmatpush3.bf16.msra.mxu1 %v2955_v61  ;;  %2209 = vmatprep.subr.bf16.mxu0 %v2963_v62  ;;  %v2991_v61 = vld [vmem:[%s3378_s1 + $0x15c] ss:$0 sps:$4 sm:$0x33]   ;;  %3414 = vst [vmem:[#allocation9_spill] sm:$0xff] %v2997_v60 }
  0x59   :  { %2225 = vmatprep.subr.bf16.mxu1 %v2969_v63 }
  0x5b   :  { %2210 = vmatpush3.bf16.msra.mxu0 %v2963_v62  ;;  %v3010_v62 = vld [vmem:[%s3378_s1 + $0x154] sm:$0xff]  }
  0x5c   :  { %2226 = vmatpush3.bf16.msra.mxu1 %v2969_v63  ;;  %2211 = vmatprep.subr.bf16.mxu0 %v2977_v13  ;;  %v3005_v63 = vsel %vm117_vm0, %v2991_v61, 0  ;;  %3416 = vst [vmem:[#allocation11_spill] sm:$0xff] %v3010_v62 }
  0x5d   :  { %2227 = vmatprep.subr.bf16.mxu1 %v2983_v59  ;;  %3415 = vst [vmem:[#allocation10_spill] sm:$0xff] %v3005_v63 }
  0x5f   :  { %2212 = vmatpush3.bf16.msra.mxu0 %v2977_v13  ;;  %v3016_v13 = vsel %vm117_vm0, %v2997_v60, 0 }
  0x60   :  { %2228 = vmatpush3.bf16.msra.mxu1 %v2983_v59  ;;  %2433 = vmatprep.subr.msk.bf16.mxu0 %vm117_vm0, %v2991_v61  ;;  %3417 = vst [vmem:[#allocation12_spill] sm:$0xff] %v3016_v13  ;;  %v3021_v59 = vld [vmem:[%s3378_s1 + $0x1ac] sm:$0xff]  }
  0x61   :  { %2434 = vmatprep.subr.msk.bf16.mxu1 %vm117_vm0, %v2997_v60  ;;  %3418 = vst [vmem:[#allocation13_spill] sm:$0xff] %v3021_v59  ;;  %v3033_v60 = vld [vmem:[%s3378_s1 + $0x14c] sm:$0xff]  }
  0x62   :  { %2214 = vmatmul.mubr.msk.bf16.vlgmr.msra.gmra.mxu0 %vm110_vm1, %v2662_v19  ;;  %3419 = vst [vmem:[#allocation14_spill] sm:$0xff] %v3033_v60  ;;  %v3039_v19 = vld [vmem:[%s3378_s1 + $0x1a4] sm:$0xff]  }
  0x63   :  { %2230 = vmatmul.mubr.msk.bf16.vlgmr.msra.gmra.mxu1 %vm110_vm1, %v2778_v36  ;;  %2234 = vmatpush3.bf16.msra.mxu0 %v3005_v63  ;;  %3420 = vst [vmem:[#allocation15_spill] sm:$0xff] %v3039_v19  ;;  %v3057_v63 = vld [vmem:[%s3378_s1 + $0x19c] sm:$0xff]  }
  0x64   :  { %2250 = vmatpush3.bf16.msra.mxu1 %v3016_v13  ;;  %2235 = vmatprep.subr.bf16.mxu0 %v3010_v62  ;;  %v3051_v13 = vld [vmem:[%s3378_s1 + $0x144] sm:$0xff]  }
  0x65   :  { %2251 = vmatprep.subr.bf16.mxu1 %v3021_v59  ;;  %2245 = vmatprep.mubr.msk.bf16.mxu0 %vm110_vm1, %v2707_v26 }
  0x66   :  { %2261 = vmatprep.mubr.msk.bf16.mxu1 %vm110_vm1, %v2807_v42 }
  0x67   :  { %2236 = vmatpush3.bf16.msra.mxu0 %v3010_v62  ;;  %v3071_v62 = vld [vmem:[%s3378_s1 + $0x194] sm:$0xff]  }
  0x68   :  { %2252 = vmatpush3.bf16.msra.mxu1 %v3021_v59  ;;  %2237 = vmatprep.subr.bf16.mxu0 %v3033_v60  ;;  %v3065_v59 = vld [vmem:[%s3378_s1 + $0x13c] sm:$0xff]  }
  0x69   :  { %2253 = vmatprep.subr.bf16.mxu1 %v3039_v19 }
  0x6b   :  { %2238 = vmatpush3.bf16.msra.mxu0 %v3033_v60  ;;  %v3085_v60 = vld [vmem:[%s3378_s1 + $0x18c] sm:$0xff]  }
  0x6c   :  { %2254 = vmatpush3.bf16.msra.mxu1 %v3039_v19  ;;  %2239 = vmatprep.subr.bf16.mxu0 %v3051_v13  ;;  %v3079_v19 = vld [vmem:[%s3378_s1 + $0x134] sm:$0xff]  }
  0x6d   :  { %2255 = vmatprep.subr.bf16.mxu1 %v3057_v63 }
  0x6f   :  { %2240 = vmatpush3.bf16.msra.mxu0 %v3051_v13 }
  0x70   :  { %2256 = vmatpush3.bf16.msra.mxu1 %v3057_v63  ;;  %2241 = vmatprep.subr.bf16.mxu0 %v3065_v59 }
  0x71   :  { %2257 = vmatprep.subr.bf16.mxu1 %v3071_v62 }
  0x73   :  { %2242 = vmatpush3.bf16.msra.mxu0 %v3065_v59 }
  0x74   :  { %2258 = vmatpush3.bf16.msra.mxu1 %v3071_v62  ;;  %2243 = vmatprep.subr.bf16.mxu0 %v3079_v19 }
  0x75   :  { %2259 = vmatprep.subr.bf16.mxu1 %v3085_v60 }
  0x77   :  { %2244 = vmatpush3.bf16.msra.mxu0 %v3079_v19 }
  0x78   :  { %2260 = vmatpush3.bf16.msra.mxu1 %v3085_v60  ;;  %2435 = vmatprep.subr.msk.bf16.mxu0 %vm117_vm0, %v2540_v0  ;;  %v3168_v0 = vld [vmem:[%s3379_s0 + $0x50] sm:$0xff]  }
  0x79   :  { %2436 = vmatprep.subr.msk.bf16.mxu1 %vm117_vm0, %v2550_v2  ;;  %v3421_v2 = vld [vmem:[#allocation2_spill] sm:$0xff] }
  0x7a   :  { %2246 = vmatmul.mubr.msk.bf16.vlgmr.msra.gmra.mxu0 %vm110_vm1, %v2783_v37 }
  0x7b   :  { %2262 = vmatmul.mubr.msk.bf16.vlgmr.msra.gmra.mxu1 %vm110_vm1, %v2895_v53  ;;  %2266 = vmatpush3.bf16.msra.mxu0 %v2561_v4  ;;  %v3423_v4 = vld [vmem:[#allocation4_spill] sm:$0xff] }
  0x7c   :  { %2282 = vmatpush3.bf16.msra.mxu1 %v2573_v6  ;;  %2267 = vmatprep.subr.bf16.mxu0 %v2545_v1  ;;  %v3425_v6 = vld [vmem:[#allocation6_spill] sm:$0xff] }
  0x7d   :  { %2283 = vmatprep.subr.bf16.mxu1 %v2555_v3  ;;  %2277 = vmatprep.mubr.msk.bf16.mxu0 %vm110_vm1, %v2700_v25 }
  0x7e   :  { %2293 = vmatprep.mubr.msk.bf16.mxu1 %vm110_vm1, %v2613_v12 }
  0x7f   :  { %2268 = vmatpush3.bf16.msra.mxu0 %v2545_v1  ;;  %v2516_v1 = vld [vmem:[%s3379_s0 + $0x58] sm:$0xff]  }
  0x80   :  { %2284 = vmatpush3.bf16.msra.mxu1 %v2555_v3  ;;  %2269 = vmatprep.subr.bf16.mxu0 %v2566_v5  ;;  %v3422_v3 = vld [vmem:[#allocation3_spill] sm:$0xff] }
  0x81   :  { %2285 = vmatprep.subr.bf16.mxu1 %v2578_v7 }
  0x83   :  { %2270 = vmatpush3.bf16.msra.mxu0 %v2566_v5  ;;  %v3424_v5 = vld [vmem:[#allocation5_spill] sm:$0xff] }
  0x84   :  { %2286 = vmatpush3.bf16.msra.mxu1 %v2578_v7  ;;  %2271 = vmatprep.subr.bf16.mxu0 %v2589_v8  ;;  %v3426_v7 = vld [vmem:[#allocation7_spill] sm:$0xff] }
  0x85   :  { %2287 = vmatprep.subr.bf16.mxu1 %v2595_v9 }
  0x87   :  { %2272 = vmatpush3.bf16.msra.mxu0 %v2589_v8  ;;  %v3427_v8 = vld [vmem:[#allocation8_spill] sm:$0xff] }
  0x88   :  { %2288 = vmatpush3.bf16.msra.mxu1 %v2595_v9  ;;  %2273 = vmatprep.subr.bf16.mxu0 %v2600_v10  ;;  %v3428_v9 = vld [vmem:[#allocation9_spill] sm:$0xff] }
  0x89   :  { %2289 = vmatprep.subr.bf16.mxu1 %v2606_v11 }
  0x8b   :  { %2274 = vmatpush3.bf16.msra.mxu0 %v2600_v10  ;;  %v3429_v10 = vld [vmem:[#allocation10_spill] sm:$0xff] }
  0x8c   :  { %2290 = vmatpush3.bf16.msra.mxu1 %v2606_v11  ;;  %2275 = vmatprep.subr.bf16.mxu0 %v2631_v14  ;;  %v3430_v11 = vld [vmem:[#allocation12_spill] sm:$0xff] }
  0x8d   :  { %2291 = vmatprep.subr.bf16.mxu1 %v2637_v15 }
  0x8f   :  { %2276 = vmatpush3.bf16.msra.mxu0 %v2631_v14  ;;  %v3432_v14 = vld [vmem:[#allocation13_spill] sm:$0xff] }
  0x90   :  { %2292 = vmatpush3.bf16.msra.mxu1 %v2637_v15  ;;  %2437 = vmatprep.subr.msk.bf16.mxu0 %vm117_vm0, %v2642_v16  ;;  %v3433_v15 = vld [vmem:[#allocation14_spill] sm:$0xff]  ;;  %v3434_v16 = vld [vmem:[#allocation15_spill] sm:$0xff] }
  0x91   :  { %2438 = vmatprep.subr.msk.bf16.mxu1 %vm117_vm0, %v2648_v17 }
  0x92   :  { %2278 = vmatmul.mubr.msk.bf16.vlgmr.msra.gmra.mxu0 %vm110_vm1, %v2778_v36 }
  0x93   :  { %2294 = vmatmul.mubr.msk.bf16.vlgmr.msra.gmra.mxu1 %vm110_vm1, %v2656_v18  ;;  %2298 = vmatpush3.bf16.msra.mxu0 %v2669_v20 }
  0x94   :  { %2314 = vmatpush3.bf16.msra.mxu1 %v2680_v22  ;;  %2299 = vmatprep.subr.bf16.mxu0 %v2674_v21 }
  0x95   :  { %2315 = vmatprep.subr.bf16.mxu1 %v2685_v23  ;;  %2309 = vmatprep.mubr.msk.bf16.mxu0 %vm110_vm1, %v2707_v26 }
  0x96   :  { %2325 = vmatprep.mubr.msk.bf16.mxu1 %vm110_vm1, %v2807_v42 }
  0x97   :  { %2300 = vmatpush3.bf16.msra.mxu0 %v2674_v21 }
  0x98   :  { %2316 = vmatpush3.bf16.msra.mxu1 %v2685_v23  ;;  %2301 = vmatprep.subr.bf16.mxu0 %v2692_v24 }
  0x99   :  { %2317 = vmatprep.subr.bf16.mxu1 %v2713_v27 }
  0x9b   :  { %2302 = vmatpush3.bf16.msra.mxu0 %v2692_v24 }
  0x9c   :  { %2318 = vmatpush3.bf16.msra.mxu1 %v2713_v27  ;;  %2303 = vmatprep.subr.bf16.mxu0 %v2725_v28 }
  0x9d   :  { %2319 = vmatprep.subr.bf16.mxu1 %v2731_v29 }
  0x9f   :  { %2304 = vmatpush3.bf16.msra.mxu0 %v2725_v28 }
  0xa0   :  { %2320 = vmatpush3.bf16.msra.mxu1 %v2731_v29  ;;  %2305 = vmatprep.subr.bf16.mxu0 %v2739_v30 }
  0xa1   :  { %2321 = vmatprep.subr.bf16.mxu1 %v2745_v31 }
  0xa3   :  { %2306 = vmatpush3.bf16.msra.mxu0 %v2739_v30 }
  0xa4   :  { %2322 = vmatpush3.bf16.msra.mxu1 %v2745_v31  ;;  %2307 = vmatprep.subr.bf16.mxu0 %v2753_v32 }
  0xa5   :  { %2323 = vmatprep.subr.bf16.mxu1 %v2764_v34 }
  0xa7   :  { %2308 = vmatpush3.bf16.msra.mxu0 %v2753_v32 }
  0xa8   :  { %2324 = vmatpush3.bf16.msra.mxu1 %v2764_v34  ;;  %2439 = vmatprep.subr.msk.bf16.mxu0 %vm117_vm0, %v2758_v33 }
  0xa9   :  { %2440 = vmatprep.subr.msk.bf16.mxu1 %vm117_vm0, %v2769_v35 }
  0xaa   :  { %2310 = vmatmul.mubr.msk.bf16.vlgmr.msra.gmra.mxu0 %vm110_vm1, %v2783_v37 }
  0xab   :  { %2326 = vmatmul.mubr.msk.bf16.vlgmr.msra.gmra.mxu1 %vm110_vm1, %v2895_v53  ;;  %2330 = vmatpush3.bf16.msra.mxu0 %v2787_v38 }
  0xac   :  { %2346 = vmatpush3.bf16.msra.mxu1 %v2797_v40  ;;  %2331 = vmatprep.subr.bf16.mxu0 %v2792_v39 }
  0xad   :  { %2347 = vmatprep.subr.bf16.mxu1 %v2802_v41  ;;  %2341 = vmatprep.mubr.msk.bf16.mxu0 %vm110_vm1, %v3168_v0 }
  0xae   :  { %2357 = vmatprep.mubr.msk.bf16.mxu1 %vm110_vm1, %v2700_v25 }
  0xaf   :  { %2332 = vmatpush3.bf16.msra.mxu0 %v2792_v39 }
  0xb0   :  { %2348 = vmatpush3.bf16.msra.mxu1 %v2802_v41  ;;  %2333 = vmatprep.subr.bf16.mxu0 %v2824_v43 }
  0xb1   :  { %2349 = vmatprep.subr.bf16.mxu1 %v2830_v44 }
  0xb3   :  { %2334 = vmatpush3.bf16.msra.mxu0 %v2824_v43 }
  0xb4   :  { %2350 = vmatpush3.bf16.msra.mxu1 %v2830_v44  ;;  %2335 = vmatprep.subr.bf16.mxu0 %v2842_v45 }
  0xb5   :  { %2351 = vmatprep.subr.bf16.mxu1 %v2848_v46 }
  0xb7   :  { %2336 = vmatpush3.bf16.msra.mxu0 %v2842_v45 }
  0xb8   :  { %2352 = vmatpush3.bf16.msra.mxu1 %v2848_v46  ;;  %2337 = vmatprep.subr.bf16.mxu0 %v2856_v47 }
  0xb9   :  { %2353 = vmatprep.subr.bf16.mxu1 %v2862_v48 }
  0xbb   :  { %2338 = vmatpush3.bf16.msra.mxu0 %v2856_v47 }
  0xbc   :  { %2354 = vmatpush3.bf16.msra.mxu1 %v2862_v48  ;;  %2339 = vmatprep.subr.bf16.mxu0 %v2870_v49 }
  0xbd   :  { %2355 = vmatprep.subr.bf16.mxu1 %v2876_v50 }
  0xbf   :  { %2340 = vmatpush3.bf16.msra.mxu0 %v2870_v49 }
  0xc0   :  { %2356 = vmatpush3.bf16.msra.mxu1 %v2876_v50  ;;  %2441 = vmatprep.subr.msk.bf16.mxu0 %vm117_vm0, %v2884_v51 }
  0xc1   :  { %2442 = vmatprep.subr.msk.bf16.mxu1 %vm117_vm0, %v2890_v52 }
  0xc2   :  { %2342 = vmatmul.mubr.msk.bf16.vlgmr.msra.gmra.mxu0 %vm110_vm1, %v2516_v1 }
  0xc3   :  { %2358 = vmatmul.mubr.msk.bf16.vlgmr.msra.gmra.mxu1 %vm110_vm1, %v2778_v36  ;;  %2362 = vmatpush3.bf16.msra.mxu0 %v2903_v54 }
  0xc4   :  { %2378 = vmatpush3.bf16.msra.mxu1 %v2914_v56  ;;  %2363 = vmatprep.subr.bf16.mxu0 %v2908_v55 }
  0xc5   :  { %2379 = vmatprep.subr.bf16.mxu1 %v2919_v57  ;;  %2373 = vmatprep.mubr.msk.bf16.mxu0 %vm110_vm1, %v2613_v12  ;;  %v3431_v12 = vld [vmem:[#allocation11_spill] sm:$0xff] }
  0xc6   :  { %2389 = vmatprep.mubr.msk.bf16.mxu1 %vm110_vm1, %v2707_v26 }
  0xc7   :  { %2364 = vmatpush3.bf16.msra.mxu0 %v2908_v55 }
  0xc8   :  { %2380 = vmatpush3.bf16.msra.mxu1 %v2919_v57  ;;  %2365 = vmatprep.subr.bf16.mxu0 %v2931_v58 }
  0xc9   :  { %2381 = vmatprep.subr.bf16.mxu1 %v3421_v2 }
  0xcb   :  { %2366 = vmatpush3.bf16.msra.mxu0 %v2931_v58 }
  0xcc   :  { %2382 = vmatpush3.bf16.msra.mxu1 %v3421_v2  ;;  %2367 = vmatprep.subr.bf16.mxu0 %v3422_v3 }
  0xcd   :  { %2383 = vmatprep.subr.bf16.mxu1 %v3423_v4 }
  0xcf   :  { %2368 = vmatpush3.bf16.msra.mxu0 %v3422_v3 }
  0xd0   :  { %2384 = vmatpush3.bf16.msra.mxu1 %v3423_v4  ;;  %2369 = vmatprep.subr.bf16.mxu0 %v3424_v5 }
  0xd1   :  { %2385 = vmatprep.subr.bf16.mxu1 %v3425_v6 }
  0xd3   :  { %2370 = vmatpush3.bf16.msra.mxu0 %v3424_v5 }
  0xd4   :  { %2386 = vmatpush3.bf16.msra.mxu1 %v3425_v6  ;;  %2371 = vmatprep.subr.bf16.mxu0 %v3426_v7 }
  0xd5   :  { %2387 = vmatprep.subr.bf16.mxu1 %v3427_v8 }
  0xd7   :  { %2372 = vmatpush3.bf16.msra.mxu0 %v3426_v7 }
  0xd8   :  { %2388 = vmatpush3.bf16.msra.mxu1 %v3427_v8  ;;  %2443 = vmatprep.subr.msk.bf16.mxu0 %vm117_vm0, %v2991_v61 }
  0xd9   :  { %2444 = vmatprep.subr.msk.bf16.mxu1 %vm117_vm0, %v3428_v9 }
  0xda   :  { %2374 = vmatmul.mubr.msk.bf16.vlgmr.msra.gmra.mxu0 %vm110_vm1, %v2656_v18  ;;  %v3273_v17 = vpop.f32.mrf.mxu0 }
  0xdb   :  { %2390 = vmatmul.mubr.msk.bf16.vlgmr.msra.gmra.mxu1 %vm110_vm1, %v2783_v37  ;;  %2394 = vmatpush3.bf16.msra.mxu0 %v3429_v10  ;;  %v3275_v18 = vpop.f32.mrf.mxu1 }
  0xdc   :  { %2410 = vmatpush3.bf16.msra.mxu1 %v3430_v11  ;;  %2395 = vmatprep.subr.bf16.mxu0 %v3431_v12  ;;  %v3277_v20 = vpop.f32.mrf.mxu0 }
  0xdd   :  { %2411 = vmatprep.subr.bf16.mxu1 %v3432_v14  ;;  %2405 = vmatprep.mubr.msk.bf16.mxu0 %vm110_vm1, %v2807_v42  ;;  %v3279_v21 = vpop.f32.mrf.mxu1 }
  0xde   :  { %2421 = vmatprep.mubr.msk.bf16.mxu1 %vm110_vm1, %v3168_v0  ;;  %v3281_v22 = vpop.f32.mrf.mxu0 }
  0xdf   :  { %2396 = vmatpush3.bf16.msra.mxu0 %v3431_v12  ;;  %v3283_v23 = vpop.f32.mrf.mxu1 }
  0xe0   :  { %2412 = vmatpush3.bf16.msra.mxu1 %v3432_v14  ;;  %2397 = vmatprep.subr.bf16.mxu0 %v3433_v15  ;;  %v3285_v24 = vpop.f32.mrf.mxu0 }
  0xe1   :  { %2413 = vmatprep.subr.bf16.mxu1 %v3434_v16  ;;  %v3287_v25 = vpop.f32.mrf.mxu1 }
  0xe3   :  { %2398 = vmatpush3.bf16.msra.mxu0 %v3433_v15 }
  0xe4   :  { %2414 = vmatpush3.bf16.msra.mxu1 %v3434_v16  ;;  %2399 = vmatprep.subr.bf16.mxu0 %v3051_v13 }
  0xe5   :  { %2415 = vmatprep.subr.bf16.mxu1 %v3057_v63 }
  0xe7   :  { %2400 = vmatpush3.bf16.msra.mxu0 %v3051_v13 }
  0xe8   :  { %2416 = vmatpush3.bf16.msra.mxu1 %v3057_v63  ;;  %2401 = vmatprep.subr.bf16.mxu0 %v3065_v59 }
  0xe9   :  { %2417 = vmatprep.subr.bf16.mxu1 %v3071_v62 }
  0xeb   :  { %2402 = vmatpush3.bf16.msra.mxu0 %v3065_v59 }
  0xec   :  { %2418 = vmatpush3.bf16.msra.mxu1 %v3071_v62  ;;  %2403 = vmatprep.subr.bf16.mxu0 %v3079_v19 }
  0xed   :  { %2419 = vmatprep.subr.bf16.mxu1 %v3085_v60 }
  0xef   :  { %2404 = vmatpush3.bf16.msra.mxu0 %v3079_v19 }
  0xf0   :  { %2420 = vmatpush3.bf16.msra.mxu1 %v3085_v60 }
  0xf2   :  { %2406 = vmatmul.mubr.msk.bf16.vlgmr.msra.gmra.mxu0 %vm110_vm1, %v2895_v53  ;;  %v3289_v26 = vpop.f32.mrf.mxu0 }
  0xf3   :  { %2422 = vmatmul.mubr.msk.bf16.vlgmr.msra.gmra.mxu1 %vm110_vm1, %v2516_v1  ;;  %v3291_v27 = vpop.f32.mrf.mxu1 }
  0xf4   :  { %v3293_v28 = vpop.f32.mrf.mxu0 }
  0xf5   :  { %v3295_v29 = vpop.f32.mrf.mxu1 }
  0xf6   :  { %v3297_v30 = vpop.f32.mrf.mxu0 }
  0xf7   :  { %v3299_v31 = vpop.f32.mrf.mxu1 }
  0xf8   :  { %v3301_v32 = vpop.f32.mrf.mxu0 }
  0xf9   :  { %v3303_v33 = vpop.f32.mrf.mxu1 }
 0x10a   :  { %v3305_v34 = vpop.f32.mrf.mxu0 }
 0x10b   :  { %v2199_v35 = vpop.f32.mrf.mxu1 }
 0x10c   :  { %v3307_v36 = vpop.f32.mrf.mxu0 }
 0x10d   :  { %3435 = vst [vmem:[#allocation2_spill] sm:$0xff] %v3307_v36  ;;  %v716_v37 = vpop.f32.mrf.mxu1  ;;  %v268_v36 = vadd.f32 %v3283_v23, %v3281_v22 }
 0x10e   :  { %v3309_v38 = vpop.f32.mrf.mxu0 }
 0x10f   :  { %3436 = vst [vmem:[#allocation3_spill] sm:$0xff] %v3309_v38  ;;  %v2200_v39 = vpop.f32.mrf.mxu1 }
 0x110   :  { %v3311_v40 = vpop.f32.mrf.mxu0 }
 0x111   :  { %3437 = vst [vmem:[#allocation4_spill] sm:$0xff] %v3311_v40  ;;  %v719_v41 = vpop.f32.mrf.mxu1 }
 0x122   :  { %v2215_v42 = vpop.f32.mrf.mxu0 }
 0x123   :  { %v2231_v43 = vpop.f32.mrf.mxu1 }
 0x124   :  { %v801_v44 = vpop.f32.mrf.mxu0 }
 0x125   :  { %v898_v45 = vpop.f32.mrf.mxu1 }
 0x126   :  { %v2216_v46 = vpop.f32.mrf.mxu0 }
 0x127   :  { %v2232_v47 = vpop.f32.mrf.mxu1 }
 0x128   :  { %v804_v48 = vpop.f32.mrf.mxu0 }
 0x129   :  { %v3313_v49 = vpop.f32.mrf.mxu1 }
 0x13a   :  { %v2247_v50 = vpop.f32.mrf.mxu0 }
 0x13b   :  { %v3315_v51 = vpop.f32.mrf.mxu1 }
 0x13c   :  { %3438 = vst [vmem:[#allocation5_spill] sm:$0xff] %v3315_v51  ;;  %v999_v52 = vpop.f32.mrf.mxu0 }
 0x13d   :  { %v3317_v53 = vpop.f32.mrf.mxu1 }
 0x13e   :  { %3439 = vst [vmem:[#allocation6_spill] sm:$0xff] %v3317_v53  ;;  %v2248_v54 = vpop.f32.mrf.mxu0  ;;  %v813_v53 = vadd.f32 %v2216_v46, %v2200_v39 }
 0x13f   :  { %v3319_v55 = vpop.f32.mrf.mxu1 }
 0x140   :  { %3440 = vst [vmem:[#allocation7_spill] sm:$0xff] %v3319_v55  ;;  %v3321_v56 = vpop.f32.mrf.mxu0  ;;  %v810_v55 = vadd.f32 %v2215_v42, %v2199_v35 }
 0x141   :  { %3441 = vst [vmem:[#allocation8_spill] sm:$0xff] %v3321_v56  ;;  %v3323_v57 = vpop.f32.mrf.mxu1 }
 0x142   :  { %3442 = vst [vmem:[#allocation9_spill] sm:$0xff] %v3323_v57  ;;  %v265_v57 = vadd.f32 %v3275_v18, %v3273_v17  ;;  %v387_v17 = vadd.f32 %v3297_v30, %v268_v36  ;;  %v915_v35 = vadd.f32 %v2231_v43, %v810_v55 }
 0x144   :  { %v386_v56 = vadd.f32 %v3289_v26, %v265_v57  ;;  %v1016_v23 = vadd.f32 %v2247_v50, %v915_v35  ;;  %v504_v30 = vadd.f32 %v3299_v31, %v387_v17 }
 0x146   :  { %v503_v22 = vadd.f32 %v3291_v27, %v386_v56  ;;  %v3448_v56 = vld [vmem:[#allocation6_spill] sm:$0xff] }
 0x148   :  { %v620_v50 = vadd.f32 %v3305_v34, %v503_v22  ;;  %v3452_v34 = vld [vmem:[#allocation7_spill] sm:$0xff] }
 0x152   :  { %v2279_v58 = vpop.f32.mrf.mxu0 }
 0x153   :  { %v2295_v59 = vpop.f32.mrf.mxu1 }
 0x154   :  { %v1157_v60 = vpop.f32.mrf.mxu0  ;;  %v1215_v42 = vadd.f32 %v2295_v59, %v2279_v58 }
 0x155   :  { %v1206_v61 = vpop.f32.mrf.mxu1 }
 0x156   :  { %v2280_v62 = vpop.f32.mrf.mxu0 }
 0x157   :  { %v2296_v63 = vpop.f32.mrf.mxu1 }
 0x158   :  { %v1160_v13 = vpop.f32.mrf.mxu0  ;;  %v1218_v57 = vadd.f32 %v2296_v63, %v2280_v62 }
 0x159   :  { %v1209_v19 = vpop.f32.mrf.mxu1 }
 0x16a   :  { %v2311_v0 = vpop.f32.mrf.mxu0 }
 0x16b   :  { %v2327_v1 = vpop.f32.mrf.mxu1 }
 0x16c   :  { %v1255_v2 = vpop.f32.mrf.mxu0 }
 0x16d   :  { %v1308_v3 = vpop.f32.mrf.mxu1 }
 0x16e   :  { %v2312_v4 = vpop.f32.mrf.mxu0 }
 0x16f   :  { %v3325_v5 = vpop.f32.mrf.mxu1  ;;  %v1273_v27 = vadd.f32 %v2312_v4, %v1218_v57 }
 0x170   :  { %3443 = vst [vmem:[#allocation10_spill] sm:$0xff] %v3325_v5  ;;  %v1258_v6 = vpop.f32.mrf.mxu0  ;;  %v257_v5 = vadd.f32 %v3279_v21, %v3277_v20 }
 0x171   :  { %v3327_v7 = vpop.f32.mrf.mxu1 }
 0x172   :  { %3444 = vst [vmem:[#allocation12_spill] sm:$0xff] %v3327_v7  ;;  %v802_v7 = vadd.f32 %v801_v44, %v716_v37  ;;  %v805_v37 = vadd.f32 %v804_v48, %v719_v41  ;;  %v1207_v44 = vadd.f32 %v1206_v61, %v1157_v60  ;;  %v1210_v48 = vadd.f32 %v1209_v19, %v1160_v13  ;;  %v3451_v13 = vld [vmem:[#allocation3_spill] sm:$0xff] }
 0x173   :  { %v621_v19 = vadd.f32 %v3451_v13, %v504_v30 }
 0x174   :  { %v913_v21 = vadd.f32 %v898_v45, %v802_v7  ;;  %v914_v41 = vadd.f32 %v3313_v49, %v805_v37  ;;  %v1271_v60 = vadd.f32 %v1258_v6, %v1210_v48 }
 0x176   :  { %v1014_v26 = vadd.f32 %v999_v52, %v913_v21 }
 0x178   :  { %v1115_v58 = vadd.f32 %v3448_v56, %v1014_v26 }
 0x182   :  { %v2343_v8 = vpop.f32.mrf.mxu0 }
 0x183   :  { %v2359_v9 = vpop.f32.mrf.mxu1 }
 0x184   :  { %v1377_v10 = vpop.f32.mrf.mxu0 }
 0x185   :  { %v1434_v11 = vpop.f32.mrf.mxu1 }
 0x186   :  { %v3329_v12 = vpop.f32.mrf.mxu0 }
 0x187   :  { %3445 = vst [vmem:[#allocation11_spill] sm:$0xff] %v3329_v12  ;;  %v2360_v14 = vpop.f32.mrf.mxu1  ;;  %v260_v12 = vadd.f32 %v3287_v25, %v3285_v24  ;;  %v1272_v24 = vadd.f32 %v2311_v0, %v1215_v42  ;;  %v916_v25 = vadd.f32 %v2232_v47, %v813_v53  ;;  %v3447_v47 = vld [vmem:[#allocation5_spill] sm:$0xff] }
 0x188   :  { %v3331_v15 = vpop.f32.mrf.mxu0  ;;  %v1117_v52 = vadd.f32 %v3447_v47, %v1016_v23 }
 0x189   :  { %3446 = vst [vmem:[#allocation13_spill] sm:$0xff] %v3331_v15  ;;  %v1437_v16 = vpop.f32.mrf.mxu1  ;;  %v384_v15 = vadd.f32 %v3293_v28, %v257_v5  ;;  %v385_v18 = vadd.f32 %v3301_v32, %v260_v12  ;;  %v1270_v28 = vadd.f32 %v1255_v2, %v1207_v44  ;;  %v1017_v45 = vadd.f32 %v2248_v54, %v916_v25  ;;  %v3453_v2 = vld [vmem:[#allocation10_spill] sm:$0xff]  ;;  %v3454_v12 = vld [vmem:[#allocation9_spill] sm:$0xff] }
 0x18a   :  { %v1325_v53 = vadd.f32 %v2327_v1, %v1272_v24  ;;  %v1326_v1 = vadd.f32 %v3453_v2, %v1273_v27  ;;  %v1121_v5 = vmax.f32 %v620_v50, %v1117_v52  ;;  %v1936_v25 = vld [vmem:[%s3380_s2] ss:$0 sm:$0xff] }
 0x18b   :  { %v501_v46 = vadd.f32 %v3295_v29, %v384_v15  ;;  %v502_v32 = vadd.f32 %v3303_v33, %v385_v18  ;;  %v3449_v29 = vld [vmem:[#allocation8_spill] sm:$0xff]  ;;  %v1323_v31 = vadd.f32 %v1308_v3, %v1270_v28  ;;  %v1118_v0 = vadd.f32 %v3452_v34, %v1017_v45 }
 0x18c   :  { %v1015_v59 = vadd.f32 %v3449_v29, %v914_v41  ;;  %v1394_v62 = vadd.f32 %v2343_v8, %v1325_v53  ;;  %v3455_v8 = vld [vmem:[#allocation12_spill] sm:$0xff] }
 0x18d   :  { %v1122_v23 = vmax.f32 %v621_v19, %v1118_v0 }
 0x18e   :  { %v1116_v15 = vadd.f32 %v3454_v12, %v1015_v59  ;;  %v1398_v35 = vmax.f32 %v1121_v5, %v1394_v62 }
 0x19a   :  { %v2375_v40 = vpop.f32.mrf.mxu0 }
 0x19b   :  { %v2391_v38 = vpop.f32.mrf.mxu1  ;;  %v1492_v36 = vadd.f32 %v2375_v40, %v2359_v9  ;;  %v3450_v40 = vld [vmem:[#allocation2_spill] sm:$0xff] }
 0x19c   :  { %v1483_v51 = vpop.f32.mrf.mxu0  ;;  %v618_v61 = vadd.f32 %v3450_v40, %v501_v46 }
 0x19d   :  { %v1532_v20 = vpop.f32.mrf.mxu1  ;;  %v1484_v55 = vadd.f32 %v1483_v51, %v1434_v11  ;;  %v1549_v49 = vadd.f32 %v2391_v38, %v1492_v36  ;;  %v1392_v51 = vadd.f32 %v1377_v10, %v1323_v31  ;;  %v1324_v38 = vadd.f32 %v3455_v8, %v1271_v60  ;;  %v3457_v10 = vld [vmem:[#allocation4_spill] sm:$0xff] }
 0x19e   :  { %v2376_v39 = vpop.f32.mrf.mxu0  ;;  %v1119_v11 = vmax.f32 %v618_v61, %v1115_v58  ;;  %v619_v22 = vadd.f32 %v3457_v10, %v502_v32 }
 0x19f   :  { %v2392_v43 = vpop.f32.mrf.mxu1  ;;  %v1495_v54 = vadd.f32 %v2376_v39, %v2360_v14  ;;  %v1547_v7 = vadd.f32 %v1532_v20, %v1484_v55  ;;  %v3456_v14 = vld [vmem:[#allocation11_spill] sm:$0xff] }
 0x1a0   :  { %v1486_v33 = vpop.f32.mrf.mxu0  ;;  %v1395_v17 = vadd.f32 %v3456_v14, %v1326_v1  ;;  %v1396_v20 = vmax.f32 %v1119_v11, %v1392_v51  ;;  %v1120_v36 = vmax.f32 %v619_v22, %v1116_v15 }
 0x1a1   :  { %v1535_v63 = vpop.f32.mrf.mxu1  ;;  %v1487_v9 = vadd.f32 %v1486_v33, %v1437_v16  ;;  %v1550_v42 = vadd.f32 %v2392_v43, %v1495_v54  ;;  %v3458_v16 = vld [vmem:[#allocation13_spill] sm:$0xff] }
 0x1a2   :  { %v1393_v24 = vadd.f32 %v3458_v16, %v1324_v38  ;;  %v1399_v43 = vmax.f32 %v1122_v23, %v1395_v17 }
 0x1a3   :  { %v1548_v57 = vadd.f32 %v1535_v63, %v1487_v9 }
 0x1a4   :  { %v1397_v50 = vmax.f32 %v1120_v36, %v1393_v24 }
 0x1b2   :  { %v2407_v4 = vpop.f32.mrf.mxu0 }
 0x1b3   :  { %v1602_v3 = vadd.f32 %v2407_v4, %v1549_v49  ;;  %v2423_v6 = vpop.f32.mrf.mxu1 }
 0x1b4   :  { %v1585_v18 = vpop.f32.mrf.mxu0 }
 0x1b5   :  { %v1655_v21 = vadd.f32 %v2423_v6, %v1602_v3  ;;  %v1600_v37 = vadd.f32 %v1585_v18, %v1547_v7  ;;  %v1638_v44 = vpop.f32.mrf.mxu1 }
 0x1b6   :  { %v2408_v26 = vpop.f32.mrf.mxu0 }
 0x1b7   :  { %v1659_v28 = vmax.f32 %v1398_v35, %v1655_v21  ;;  %v1653_v39 = vadd.f32 %v1638_v44, %v1600_v37  ;;  %v1603_v46 = vadd.f32 %v2408_v26, %v1550_v42  ;;  %v2424_v30 = vpop.f32.mrf.mxu1 }
 0x1b8   :  { %v1588_v41 = vpop.f32.mrf.mxu0 }
 0x1b9   :  { %v1670_v45 = vadd.f32 %v1936_v25, %v1659_v28  ;;  %v1657_v48 = vmax.f32 %v1396_v20, %v1653_v39  ;;  %v1656_v32 = vadd.f32 %v2424_v30, %v1603_v46  ;;  %v1601_v27 = vadd.f32 %v1588_v41, %v1548_v57  ;;  %v1641_v47 = vpop.f32.mrf.mxu1 }
 0x1bb   :  { %v1674_v52 = vmul.f32 0.01, %v1670_v45  ;;  %v1668_v53 = vadd.f32 %v1936_v25, %v1657_v48  ;;  %v1660_v55 = vmax.f32 %v1399_v43, %v1656_v32  ;;  %v1654_v56 = vadd.f32 %v1641_v47, %v1601_v27 }
 0x1bd   :  { %v1678_v58 = vmax.f32 %v1670_v45, %v1674_v52  ;;  %v1672_v29 = vmul.f32 0.01, %v1668_v53  ;;  %v1671_v59 = vadd.f32 %v1936_v25, %v1660_v55  ;;  %v1658_v31 = vmax.f32 %v1397_v50, %v1654_v56 }
 0x1bf   :  { %v1943_v60 = vpack.c.bf16 %v1678_v58, %v1678_v58  ;;  %v1676_v33 = vmax.f32 %v1668_v53, %v1672_v29  ;;  %v1675_v40 = vmul.f32 0.01, %v1671_v59  ;;  %v1669_v61 = vadd.f32 %v1936_v25, %v1658_v31 }
 0x1c1   :  { %1699 = vst.msk [vmem:[%s3381_s3 + $0x8] sm:$0xf] %vm1696_vm2, %v1943_v60  ;;  %v1941_v62 = vpack.c.bf16 %v1676_v33, %v1676_v33  ;;  %v1679_v49 = vmax.f32 %v1671_v59, %v1675_v40  ;;  %v1673_v54 = vmul.f32 0.01, %v1669_v61 }
 0x1c3   :  { %1697 = vst.msk [vmem:[%s3381_s3] sm:$0xf] %vm1696_vm2, %v1941_v62  ;;  %v1944_v63 = vpack.c.bf16 %v1679_v49, %v1679_v49  ;;  %v1677_v13 = vmax.f32 %v1669_v61, %v1673_v54 }
 0x1c5   :  { %1700 = vst.msk [vmem:[%s3381_s3 + $0xc] sm:$0xf] %vm1696_vm2, %v1944_v63  ;;  %v1942_v19 = vpack.c.bf16 %v1677_v13, %v1677_v13 }
 0x1c7   :  { %1698 = vst.msk [vmem:[%s3381_s3 + $0x4] sm:$0xf] %vm1696_vm2, %v1942_v19 }

// kernel: cnn2_forward.4
= control target key start
LH: loop header
LB: loop body
LE: loop exit
PB: predicated region body
PF: predicated region fallthrough
CT: control target
= control target key end

     0   :  { %v2189_v0 = vmov 0.0   ;;  %vm2190_vm0 = vmmov 0   ;;  %vm98_vm1 = vcmask 785408   ;;  %s2870_s1 = inlined_call_operand.vmem [shape: bf16[5,2,96,128], index: 1, kind: input, shape index: {}]   ;;  %s2871_s0 = inlined_call_operand.vmem [shape: bf16[2,3,16,96], index: 0, kind: input, shape index: {}]   ;;  %s2872_s2 = inlined_call_operand.vmem [shape: f32[1,128], index: 2, kind: input, shape index: {}]   ;;  %s2873_s3 = inlined_call_operand.vmem [shape: bf16[16,128], index: 3, kind: output, shape index: {}]  }
   0x1   :  { %1801 = vmatprep.subr.bf16.mxu0 %v2189_v0  ;;  %1817 = vmatprep.subr.bf16.mxu1 %v2189_v0  ;;  %v2216_v1 = vld [vmem:[%s2870_s1 + $0x88] sm:$0xff]   ;;  %v2231_v3 = vld [vmem:[%s2870_s1 + $0x80] sm:$0xff]   ;;  %v2245_v5 = vld [vmem:[%s2870_s1 + $0x78] sm:$0xff]  }
   0x2   :  { %v2221_v2 = vld [vmem:[%s2870_s1 + $0x28] sm:$0xff]   ;;  %1813 = vmatprep.mubr.msk.bf16.mxu0 %vm2190_vm0, %v2189_v0  ;;  %1829 = vmatprep.mubr.msk.bf16.mxu1 %vm2190_vm0, %v2189_v0  ;;  %v2238_v4 = vld [vmem:[%s2870_s1 + $0x20] sm:$0xff]   ;;  %v2252_v6 = vld [vmem:[%s2870_s1 + $0x18] sm:$0xff]  }
   0x3   :  { %1802 = vmatpush3.bf16.msra.mxu0 %v2216_v1  ;;  %1818 = vmatpush3.bf16.msra.mxu1 %v2221_v2  ;;  %v2259_v7 = vld [vmem:[%s2870_s1 + $0x70] sm:$0xff]   ;;  %v2273_v9 = vld [vmem:[%s2870_s1 + $0x68] sm:$0xff]   ;;  %v2287_v11 = vld [vmem:[%s2870_s1 + $0x60] sm:$0xff]  }
   0x4   :  { %1803 = vmatprep.subr.bf16.mxu0 %v2189_v0  ;;  %1819 = vmatprep.subr.bf16.mxu1 %v2189_v0  ;;  %v2266_v8 = vld [vmem:[%s2870_s1 + $0x10] sm:$0xff]   ;;  %v2280_v10 = vld [vmem:[%s2870_s1 + $0x8] sm:$0xff]   ;;  %v2294_v12 = vld [vmem:[%s2870_s1] sm:$0xff]  }
   0x5   :  { %v2300_v13 = vld [vmem:[%s2871_s0 + $0x18] sm:$0xff]   ;;  %v2305_v14 = vld [vmem:[%s2871_s0] sm:$0xff]   ;;  %v2311_v15 = vld [vmem:[%s2870_s1 + $0xe8] sm:$0xff]  }
   0x6   :  { %v2318_v16 = vld [vmem:[%s2870_s1 + $0x148] sm:$0xff]   ;;  %v2329_v17 = vld [vmem:[%s2870_s1 + $0xe0] sm:$0xff]   ;;  %v2347_v19 = vld [vmem:[%s2870_s1 + $0xd8] sm:$0xff]  }
   0x7   :  { %1804 = vmatpush3.bf16.msra.mxu0 %v2231_v3  ;;  %1820 = vmatpush3.bf16.msra.mxu1 %v2238_v4  ;;  %v2336_v18 = vld [vmem:[%s2870_s1 + $0x140] sm:$0xff]   ;;  %v2354_v20 = vld [vmem:[%s2870_s1 + $0x138] sm:$0xff]   ;;  %v2361_v21 = vld [vmem:[%s2870_s1 + $0xd0] sm:$0xff]  }
   0x8   :  { %1805 = vmatprep.subr.bf16.mxu0 %v2189_v0  ;;  %1821 = vmatprep.subr.bf16.mxu1 %v2189_v0  ;;  %v2368_v22 = vld [vmem:[%s2870_s1 + $0x130] sm:$0xff]   ;;  %v2375_v23 = vld [vmem:[%s2870_s1 + $0xc8] sm:$0xff]   ;;  %v2389_v25 = vld [vmem:[%s2870_s1 + $0xc0] sm:$0xff]  }
   0x9   :  { %v2382_v24 = vld [vmem:[%s2870_s1 + $0x128] sm:$0xff]   ;;  %v2396_v26 = vld [vmem:[%s2870_s1 + $0x120] sm:$0xff]   ;;  %v2420_v30 = vld [vmem:[%s2870_s1 + $0xb8] sm:$0xff]  }
   0xa   :  { %v2402_v27 = vld [vmem:[%s2871_s0 + $0x8] sm:$0xff]   ;;  %v2407_v28 = vld [vmem:[%s2871_s0 + $0x20] sm:$0xff]   ;;  %v2438_v32 = vld [vmem:[%s2870_s1 + $0xb0] sm:$0xff]  }
   0xb   :  { %1806 = vmatpush3.bf16.msra.mxu0 %v2245_v5  ;;  %1822 = vmatpush3.bf16.msra.mxu1 %v2252_v6  ;;  %v2413_v29 = vld [vmem:[%s2870_s1 + $0x1a8] sm:$0xff]   ;;  %v2431_v31 = vld [vmem:[%s2870_s1 + $0x1a0] sm:$0xff]   ;;  %v2449_v33 = vld [vmem:[%s2870_s1 + $0x198] sm:$0xff]  }
   0xc   :  { %1807 = vmatprep.subr.bf16.mxu0 %v2189_v0  ;;  %1823 = vmatprep.subr.bf16.mxu1 %v2189_v0  ;;  %v2456_v34 = vld [vmem:[%s2870_s1 + $0xa8] sm:$0xff]   ;;  %v2463_v35 = vld [vmem:[%s2870_s1 + $0x190] sm:$0xff]   ;;  %v2470_v36 = vld [vmem:[%s2870_s1 + $0xa0] sm:$0xff]  }
   0xd   :  { %v2477_v37 = vld [vmem:[%s2870_s1 + $0x188] sm:$0xff]   ;;  %v2484_v38 = vld [vmem:[%s2870_s1 + $0x98] sm:$0xff]   ;;  %v2491_v39 = vld [vmem:[%s2870_s1 + $0x180] sm:$0xff]  }
   0xe   :  { %v2498_v40 = vld [vmem:[%s2870_s1 + $0x90] sm:$0xff]   ;;  %v2510_v42 = vld [vmem:[%s2870_s1 + $0x58] sm:$0xff]   ;;  %v2546_v46 = vld [vmem:[%s2870_s1 + $0x48] sm:$0xff]  }
   0xf   :  { %1808 = vmatpush3.bf16.msra.mxu0 %v2259_v7  ;;  %1824 = vmatpush3.bf16.msra.mxu1 %v2266_v8  ;;  %v2504_v41 = vld [vmem:[%s2871_s0 + $0x10] sm:$0xff]   ;;  %v2517_v43 = vld [vmem:[%s2870_s1 + $0x118] sm:$0xff]   ;;  %v2553_v47 = vld [vmem:[%s2870_s1 + $0x108] sm:$0xff]  }
  0x10   :  { %1809 = vmatprep.subr.bf16.mxu0 %v2189_v0  ;;  %1825 = vmatprep.subr.bf16.mxu1 %v2189_v0  ;;  %v2528_v44 = vld [vmem:[%s2870_s1 + $0x50] sm:$0xff]   ;;  %v2560_v48 = vld [vmem:[%s2870_s1 + $0x40] sm:$0xff]   ;;  %v2574_v50 = vld [vmem:[%s2870_s1 + $0x38] sm:$0xff]  }
  0x11   :  { %v2535_v45 = vld [vmem:[%s2870_s1 + $0x110] sm:$0xff]   ;;  %v2567_v49 = vld [vmem:[%s2870_s1 + $0x100] sm:$0xff]   ;;  %v2581_v51 = vld [vmem:[%s2870_s1 + $0xf8] sm:$0xff]  }
  0x12   :  { %v2588_v52 = vld [vmem:[%s2870_s1 + $0x30] sm:$0xff]   ;;  %v2602_v54 = vld [vmem:[%s2870_s1 + $0x178] sm:$0xff]   ;;  %v2638_v58 = vld [vmem:[%s2870_s1 + $0x168] sm:$0xff]  }
  0x13   :  { %1810 = vmatpush3.bf16.msra.mxu0 %v2273_v9  ;;  %1826 = vmatpush3.bf16.msra.mxu1 %v2280_v10  ;;  %v2595_v53 = vld [vmem:[%s2870_s1 + $0xf0] sm:$0xff]   ;;  %v2609_v55 = vld [vmem:[%s2870_s1 + $0x1d8] sm:$0xff]   ;;  %v2645_v59 = vld [vmem:[%s2870_s1 + $0x1c8] sm:$0xff]  }
  0x14   :  { %1811 = vmatprep.subr.bf16.mxu0 %v2189_v0  ;;  %1827 = vmatprep.subr.bf16.mxu1 %v2189_v0  ;;  %v2620_v56 = vld [vmem:[%s2870_s1 + $0x170] sm:$0xff]   ;;  %v2652_v60 = vld [vmem:[%s2870_s1 + $0x160] sm:$0xff]   ;;  %v2666_v62 = vld [vmem:[%s2870_s1 + $0x158] sm:$0xff]  }
  0x15   :  { %v2627_v57 = vld [vmem:[%s2870_s1 + $0x1d0] sm:$0xff]   ;;  %v2659_v61 = vld [vmem:[%s2870_s1 + $0x1c0] sm:$0xff]   ;;  %v2673_v63 = vld [vmem:[%s2870_s1 + $0x1b8] sm:$0xff]  }
  0x16   :  { %2875 = vst [vmem:[#allocation2_spill] sm:$0xff] %v2659_v61 }
  0x17   :  { %1812 = vmatpush3.bf16.msra.mxu0 %v2287_v11  ;;  %1828 = vmatpush3.bf16.msra.mxu1 %v2294_v12 }
  0x18   :  { %1833 = vmatprep.subr.bf16.mxu0 %v2189_v0  ;;  %1849 = vmatprep.subr.bf16.mxu1 %v2189_v0 }
  0x1a   :  { %1814 = vmatmul.mubr.msk.bf16.vlgmr.msra.gmra.mxu0 %vm98_vm1, %v2300_v13  ;;  %1830 = vmatmul.mubr.msk.bf16.vlgmr.msra.gmra.mxu1 %vm98_vm1, %v2305_v14 }
  0x1b   :  { %1834 = vmatpush3.bf16.msra.mxu0 %v2311_v15  ;;  %1850 = vmatpush3.bf16.msra.mxu1 %v2318_v16 }
  0x1c   :  { %1835 = vmatprep.subr.bf16.mxu0 %v2189_v0  ;;  %1851 = vmatprep.subr.bf16.mxu1 %v2189_v0 }
  0x1d   :  { %1845 = vmatprep.mubr.msk.bf16.mxu0 %vm2190_vm0, %v2189_v0  ;;  %1861 = vmatprep.mubr.msk.bf16.mxu1 %vm2190_vm0, %v2189_v0 }
  0x1f   :  { %1836 = vmatpush3.bf16.msra.mxu0 %v2329_v17  ;;  %1852 = vmatpush3.bf16.msra.mxu1 %v2336_v18 }
  0x20   :  { %1837 = vmatprep.subr.bf16.mxu0 %v2189_v0  ;;  %1853 = vmatprep.subr.bf16.mxu1 %v2189_v0 }
  0x23   :  { %1838 = vmatpush3.bf16.msra.mxu0 %v2347_v19  ;;  %1854 = vmatpush3.bf16.msra.mxu1 %v2354_v20 }
  0x24   :  { %1839 = vmatprep.subr.bf16.mxu0 %v2189_v0  ;;  %1855 = vmatprep.subr.bf16.mxu1 %v2189_v0 }
  0x27   :  { %1840 = vmatpush3.bf16.msra.mxu0 %v2361_v21  ;;  %1856 = vmatpush3.bf16.msra.mxu1 %v2368_v22 }
  0x28   :  { %1841 = vmatprep.subr.bf16.mxu0 %v2189_v0  ;;  %1857 = vmatprep.subr.bf16.mxu1 %v2189_v0 }
  0x2b   :  { %1842 = vmatpush3.bf16.msra.mxu0 %v2375_v23  ;;  %1858 = vmatpush3.bf16.msra.mxu1 %v2382_v24 }
  0x2c   :  { %1843 = vmatprep.subr.bf16.mxu0 %v2189_v0  ;;  %1859 = vmatprep.subr.bf16.mxu1 %v2189_v0 }
  0x2f   :  { %1844 = vmatpush3.bf16.msra.mxu0 %v2389_v25  ;;  %1860 = vmatpush3.bf16.msra.mxu1 %v2396_v26 }
  0x30   :  { %1865 = vmatprep.subr.bf16.mxu0 %v2189_v0  ;;  %1881 = vmatprep.subr.bf16.mxu1 %v2189_v0 }
  0x32   :  { %1846 = vmatmul.mubr.msk.bf16.vlgmr.msra.gmra.mxu0 %vm98_vm1, %v2402_v27  ;;  %1862 = vmatmul.mubr.msk.bf16.vlgmr.msra.gmra.mxu1 %vm98_vm1, %v2407_v28 }
  0x33   :  { %1866 = vmatpush3.bf16.msra.mxu0 %v2413_v29  ;;  %1882 = vmatpush3.bf16.msra.mxu1 %v2420_v30 }
  0x34   :  { %1867 = vmatprep.subr.bf16.mxu0 %v2189_v0  ;;  %1883 = vmatprep.subr.bf16.mxu1 %v2189_v0 }
  0x35   :  { %1877 = vmatprep.mubr.msk.bf16.mxu0 %vm2190_vm0, %v2189_v0  ;;  %1893 = vmatprep.mubr.msk.bf16.mxu1 %vm2190_vm0, %v2189_v0 }
  0x37   :  { %1868 = vmatpush3.bf16.msra.mxu0 %v2431_v31  ;;  %1884 = vmatpush3.bf16.msra.mxu1 %v2438_v32 }
  0x38   :  { %1869 = vmatprep.subr.bf16.mxu0 %v2189_v0  ;;  %1885 = vmatprep.subr.bf16.mxu1 %v2189_v0 }
  0x3b   :  { %1870 = vmatpush3.bf16.msra.mxu0 %v2449_v33  ;;  %1886 = vmatpush3.bf16.msra.mxu1 %v2456_v34 }
  0x3c   :  { %1871 = vmatprep.subr.bf16.mxu0 %v2189_v0  ;;  %1887 = vmatprep.subr.bf16.mxu1 %v2189_v0 }
  0x3f   :  { %1872 = vmatpush3.bf16.msra.mxu0 %v2463_v35  ;;  %1888 = vmatpush3.bf16.msra.mxu1 %v2470_v36 }
  0x40   :  { %1873 = vmatprep.subr.bf16.mxu0 %v2189_v0  ;;  %1889 = vmatprep.subr.bf16.mxu1 %v2189_v0 }
  0x43   :  { %1874 = vmatpush3.bf16.msra.mxu0 %v2477_v37  ;;  %1890 = vmatpush3.bf16.msra.mxu1 %v2484_v38 }
  0x44   :  { %1875 = vmatprep.subr.bf16.mxu0 %v2189_v0  ;;  %1891 = vmatprep.subr.bf16.mxu1 %v2189_v0 }
  0x47   :  { %1876 = vmatpush3.bf16.msra.mxu0 %v2491_v39  ;;  %1892 = vmatpush3.bf16.msra.mxu1 %v2498_v40 }
  0x48   :  { %1897 = vmatprep.subr.bf16.mxu0 %v2189_v0  ;;  %1913 = vmatprep.subr.bf16.mxu1 %v2189_v0 }
  0x4a   :  { %1878 = vmatmul.mubr.msk.bf16.vlgmr.msra.gmra.mxu0 %vm98_vm1, %v2504_v41  ;;  %1894 = vmatmul.mubr.msk.bf16.vlgmr.msra.gmra.mxu1 %vm98_vm1, %v2300_v13 }
  0x4b   :  { %1898 = vmatpush3.bf16.msra.mxu0 %v2510_v42  ;;  %1914 = vmatpush3.bf16.msra.mxu1 %v2517_v43 }
  0x4c   :  { %1899 = vmatprep.subr.bf16.mxu0 %v2189_v0  ;;  %1915 = vmatprep.subr.bf16.mxu1 %v2189_v0 }
  0x4d   :  { %1909 = vmatprep.mubr.msk.bf16.mxu0 %vm2190_vm0, %v2189_v0  ;;  %1925 = vmatprep.mubr.msk.bf16.mxu1 %vm2190_vm0, %v2189_v0 }
  0x4f   :  { %1900 = vmatpush3.bf16.msra.mxu0 %v2528_v44  ;;  %1916 = vmatpush3.bf16.msra.mxu1 %v2535_v45 }
  0x50   :  { %1901 = vmatprep.subr.bf16.mxu0 %v2189_v0  ;;  %1917 = vmatprep.subr.bf16.mxu1 %v2189_v0 }
  0x53   :  { %1902 = vmatpush3.bf16.msra.mxu0 %v2546_v46  ;;  %1918 = vmatpush3.bf16.msra.mxu1 %v2553_v47 }
  0x54   :  { %1903 = vmatprep.subr.bf16.mxu0 %v2189_v0  ;;  %1919 = vmatprep.subr.bf16.mxu1 %v2189_v0 }
  0x57   :  { %1904 = vmatpush3.bf16.msra.mxu0 %v2560_v48  ;;  %1920 = vmatpush3.bf16.msra.mxu1 %v2567_v49 }
  0x58   :  { %1905 = vmatprep.subr.bf16.mxu0 %v2189_v0  ;;  %1921 = vmatprep.subr.bf16.mxu1 %v2189_v0 }
  0x5b   :  { %1906 = vmatpush3.bf16.msra.mxu0 %v2574_v50  ;;  %1922 = vmatpush3.bf16.msra.mxu1 %v2581_v51 }
  0x5c   :  { %1907 = vmatprep.subr.bf16.mxu0 %v2189_v0  ;;  %1923 = vmatprep.subr.bf16.mxu1 %v2189_v0 }
  0x5f   :  { %1908 = vmatpush3.bf16.msra.mxu0 %v2588_v52  ;;  %1924 = vmatpush3.bf16.msra.mxu1 %v2595_v53 }
  0x60   :  { %1929 = vmatprep.subr.bf16.mxu0 %v2189_v0  ;;  %1945 = vmatprep.subr.bf16.mxu1 %v2189_v0 }
  0x62   :  { %1910 = vmatmul.mubr.msk.bf16.vlgmr.msra.gmra.mxu0 %vm98_vm1, %v2305_v14  ;;  %1926 = vmatmul.mubr.msk.bf16.vlgmr.msra.gmra.mxu1 %vm98_vm1, %v2402_v27  ;;  %v2680_v14 = vld [vmem:[%s2870_s1 + $0x150] sm:$0xff]  }
  0x63   :  { %1930 = vmatpush3.bf16.msra.mxu0 %v2602_v54  ;;  %1946 = vmatpush3.bf16.msra.mxu1 %v2609_v55 }
  0x64   :  { %1931 = vmatprep.subr.bf16.mxu0 %v2189_v0  ;;  %1947 = vmatprep.subr.bf16.mxu1 %v2189_v0 }
  0x65   :  { %1941 = vmatprep.mubr.msk.bf16.mxu0 %vm2190_vm0, %v2189_v0  ;;  %1957 = vmatprep.mubr.msk.bf16.mxu1 %vm2190_vm0, %v2189_v0 }
  0x67   :  { %1932 = vmatpush3.bf16.msra.mxu0 %v2620_v56  ;;  %1948 = vmatpush3.bf16.msra.mxu1 %v2627_v57 }
  0x68   :  { %1933 = vmatprep.subr.bf16.mxu0 %v2189_v0  ;;  %1949 = vmatprep.subr.bf16.mxu1 %v2189_v0 }
  0x6b   :  { %1934 = vmatpush3.bf16.msra.mxu0 %v2638_v58  ;;  %1950 = vmatpush3.bf16.msra.mxu1 %v2645_v59 }
  0x6c   :  { %1935 = vmatprep.subr.bf16.mxu0 %v2189_v0  ;;  %1951 = vmatprep.subr.bf16.mxu1 %v2189_v0 }
  0x6f   :  { %1936 = vmatpush3.bf16.msra.mxu0 %v2652_v60  ;;  %1952 = vmatpush3.bf16.msra.mxu1 %v2659_v61  ;;  %v2687_v61 = vld [vmem:[%s2870_s1 + $0x1b0] sm:$0xff]  }
  0x70   :  { %1937 = vmatprep.subr.bf16.mxu0 %v2189_v0  ;;  %1953 = vmatprep.subr.bf16.mxu1 %v2189_v0 }
  0x73   :  { %1938 = vmatpush3.bf16.msra.mxu0 %v2666_v62  ;;  %1954 = vmatpush3.bf16.msra.mxu1 %v2673_v63 }
  0x74   :  { %1939 = vmatprep.subr.bf16.mxu0 %v2189_v0  ;;  %1955 = vmatprep.subr.bf16.mxu1 %v2189_v0 }
  0x77   :  { %1940 = vmatpush3.bf16.msra.mxu0 %v2680_v14  ;;  %1956 = vmatpush3.bf16.msra.mxu1 %v2687_v61 }
  0x78   :  { %1961 = vmatprep.subr.bf16.mxu0 %v2189_v0  ;;  %1977 = vmatprep.subr.bf16.mxu1 %v2189_v0 }
  0x7a   :  { %1942 = vmatmul.mubr.msk.bf16.vlgmr.msra.gmra.mxu0 %vm98_vm1, %v2407_v28  ;;  %1958 = vmatmul.mubr.msk.bf16.vlgmr.msra.gmra.mxu1 %vm98_vm1, %v2504_v41 }
  0x7b   :  { %1962 = vmatpush3.bf16.msra.mxu0 %v2216_v1  ;;  %1978 = vmatpush3.bf16.msra.mxu1 %v2221_v2  ;;  %v2789_v1 = vld [vmem:[%s2871_s0 + $0x28] sm:$0xff]  }
  0x7c   :  { %1963 = vmatprep.subr.bf16.mxu0 %v2189_v0  ;;  %1979 = vmatprep.subr.bf16.mxu1 %v2189_v0 }
  0x7d   :  { %1973 = vmatprep.mubr.msk.bf16.mxu0 %vm2190_vm0, %v2189_v0  ;;  %1989 = vmatprep.mubr.msk.bf16.mxu1 %vm2190_vm0, %v2189_v0 }
  0x7f   :  { %1964 = vmatpush3.bf16.msra.mxu0 %v2231_v3  ;;  %1980 = vmatpush3.bf16.msra.mxu1 %v2238_v4 }
  0x80   :  { %1965 = vmatprep.subr.bf16.mxu0 %v2189_v0  ;;  %1981 = vmatprep.subr.bf16.mxu1 %v2189_v0 }
  0x83   :  { %1966 = vmatpush3.bf16.msra.mxu0 %v2245_v5  ;;  %1982 = vmatpush3.bf16.msra.mxu1 %v2252_v6 }
  0x84   :  { %1967 = vmatprep.subr.bf16.mxu0 %v2189_v0  ;;  %1983 = vmatprep.subr.bf16.mxu1 %v2189_v0 }
  0x87   :  { %1968 = vmatpush3.bf16.msra.mxu0 %v2259_v7  ;;  %1984 = vmatpush3.bf16.msra.mxu1 %v2266_v8 }
  0x88   :  { %1969 = vmatprep.subr.bf16.mxu0 %v2189_v0  ;;  %1985 = vmatprep.subr.bf16.mxu1 %v2189_v0 }
  0x8b   :  { %1970 = vmatpush3.bf16.msra.mxu0 %v2273_v9  ;;  %1986 = vmatpush3.bf16.msra.mxu1 %v2280_v10 }
  0x8c   :  { %1971 = vmatprep.subr.bf16.mxu0 %v2189_v0  ;;  %1987 = vmatprep.subr.bf16.mxu1 %v2189_v0 }
  0x8f   :  { %1972 = vmatpush3.bf16.msra.mxu0 %v2287_v11  ;;  %1988 = vmatpush3.bf16.msra.mxu1 %v2294_v12  ;;  %v2876_v12 = vld [vmem:[#allocation2_spill] sm:$0xff] }
  0x90   :  { %1993 = vmatprep.subr.bf16.mxu0 %v2189_v0  ;;  %2009 = vmatprep.subr.bf16.mxu1 %v2189_v0 }
  0x92   :  { %1974 = vmatmul.mubr.msk.bf16.vlgmr.msra.gmra.mxu0 %vm98_vm1, %v2402_v27  ;;  %1990 = vmatmul.mubr.msk.bf16.vlgmr.msra.gmra.mxu1 %vm98_vm1, %v2300_v13 }
  0x93   :  { %1994 = vmatpush3.bf16.msra.mxu0 %v2311_v15  ;;  %2010 = vmatpush3.bf16.msra.mxu1 %v2318_v16 }
  0x94   :  { %1995 = vmatprep.subr.bf16.mxu0 %v2189_v0  ;;  %2011 = vmatprep.subr.bf16.mxu1 %v2189_v0 }
  0x95   :  { %2005 = vmatprep.mubr.msk.bf16.mxu0 %vm2190_vm0, %v2189_v0  ;;  %2021 = vmatprep.mubr.msk.bf16.mxu1 %vm2190_vm0, %v2189_v0 }
  0x97   :  { %1996 = vmatpush3.bf16.msra.mxu0 %v2329_v17  ;;  %2012 = vmatpush3.bf16.msra.mxu1 %v2336_v18 }
  0x98   :  { %1997 = vmatprep.subr.bf16.mxu0 %v2189_v0  ;;  %2013 = vmatprep.subr.bf16.mxu1 %v2189_v0 }
  0x9b   :  { %1998 = vmatpush3.bf16.msra.mxu0 %v2347_v19  ;;  %2014 = vmatpush3.bf16.msra.mxu1 %v2354_v20 }
  0x9c   :  { %1999 = vmatprep.subr.bf16.mxu0 %v2189_v0  ;;  %2015 = vmatprep.subr.bf16.mxu1 %v2189_v0 }
  0x9f   :  { %2000 = vmatpush3.bf16.msra.mxu0 %v2361_v21  ;;  %2016 = vmatpush3.bf16.msra.mxu1 %v2368_v22 }
  0xa0   :  { %2001 = vmatprep.subr.bf16.mxu0 %v2189_v0  ;;  %2017 = vmatprep.subr.bf16.mxu1 %v2189_v0 }
  0xa3   :  { %2002 = vmatpush3.bf16.msra.mxu0 %v2375_v23  ;;  %2018 = vmatpush3.bf16.msra.mxu1 %v2382_v24 }
  0xa4   :  { %2003 = vmatprep.subr.bf16.mxu0 %v2189_v0  ;;  %2019 = vmatprep.subr.bf16.mxu1 %v2189_v0 }
  0xa7   :  { %2004 = vmatpush3.bf16.msra.mxu0 %v2389_v25  ;;  %2020 = vmatpush3.bf16.msra.mxu1 %v2396_v26 }
  0xa8   :  { %2025 = vmatprep.subr.bf16.mxu0 %v2189_v0  ;;  %2041 = vmatprep.subr.bf16.mxu1 %v2189_v0 }
  0xaa   :  { %2006 = vmatmul.mubr.msk.bf16.vlgmr.msra.gmra.mxu0 %vm98_vm1, %v2407_v28  ;;  %2022 = vmatmul.mubr.msk.bf16.vlgmr.msra.gmra.mxu1 %vm98_vm1, %v2504_v41 }
  0xab   :  { %2026 = vmatpush3.bf16.msra.mxu0 %v2413_v29  ;;  %2042 = vmatpush3.bf16.msra.mxu1 %v2420_v30 }
  0xac   :  { %2027 = vmatprep.subr.bf16.mxu0 %v2189_v0  ;;  %2043 = vmatprep.subr.bf16.mxu1 %v2189_v0 }
  0xad   :  { %2037 = vmatprep.mubr.msk.bf16.mxu0 %vm2190_vm0, %v2189_v0  ;;  %2053 = vmatprep.mubr.msk.bf16.mxu1 %vm2190_vm0, %v2189_v0 }
  0xaf   :  { %2028 = vmatpush3.bf16.msra.mxu0 %v2431_v31  ;;  %2044 = vmatpush3.bf16.msra.mxu1 %v2438_v32 }
  0xb0   :  { %2029 = vmatprep.subr.bf16.mxu0 %v2189_v0  ;;  %2045 = vmatprep.subr.bf16.mxu1 %v2189_v0 }
  0xb3   :  { %2030 = vmatpush3.bf16.msra.mxu0 %v2449_v33  ;;  %2046 = vmatpush3.bf16.msra.mxu1 %v2456_v34 }
  0xb4   :  { %2031 = vmatprep.subr.bf16.mxu0 %v2189_v0  ;;  %2047 = vmatprep.subr.bf16.mxu1 %v2189_v0 }
  0xb7   :  { %2032 = vmatpush3.bf16.msra.mxu0 %v2463_v35  ;;  %2048 = vmatpush3.bf16.msra.mxu1 %v2470_v36 }
  0xb8   :  { %2033 = vmatprep.subr.bf16.mxu0 %v2189_v0  ;;  %2049 = vmatprep.subr.bf16.mxu1 %v2189_v0 }
  0xbb   :  { %2034 = vmatpush3.bf16.msra.mxu0 %v2477_v37  ;;  %2050 = vmatpush3.bf16.msra.mxu1 %v2484_v38 }
  0xbc   :  { %2035 = vmatprep.subr.bf16.mxu0 %v2189_v0  ;;  %2051 = vmatprep.subr.bf16.mxu1 %v2189_v0 }
  0xbf   :  { %2036 = vmatpush3.bf16.msra.mxu0 %v2491_v39  ;;  %2052 = vmatpush3.bf16.msra.mxu1 %v2498_v40 }
  0xc0   :  { %2057 = vmatprep.subr.bf16.mxu0 %v2189_v0  ;;  %2073 = vmatprep.subr.bf16.mxu1 %v2189_v0 }
  0xc2   :  { %2038 = vmatmul.mubr.msk.bf16.vlgmr.msra.gmra.mxu0 %vm98_vm1, %v2789_v1  ;;  %2054 = vmatmul.mubr.msk.bf16.vlgmr.msra.gmra.mxu1 %vm98_vm1, %v2402_v27 }
  0xc3   :  { %2058 = vmatpush3.bf16.msra.mxu0 %v2510_v42  ;;  %2074 = vmatpush3.bf16.msra.mxu1 %v2517_v43 }
  0xc4   :  { %2059 = vmatprep.subr.bf16.mxu0 %v2189_v0  ;;  %2075 = vmatprep.subr.bf16.mxu1 %v2189_v0 }
  0xc5   :  { %2069 = vmatprep.mubr.msk.bf16.mxu0 %vm2190_vm0, %v2189_v0  ;;  %2085 = vmatprep.mubr.msk.bf16.mxu1 %vm2190_vm0, %v2189_v0 }
  0xc7   :  { %2060 = vmatpush3.bf16.msra.mxu0 %v2528_v44  ;;  %2076 = vmatpush3.bf16.msra.mxu1 %v2535_v45 }
  0xc8   :  { %2061 = vmatprep.subr.bf16.mxu0 %v2189_v0  ;;  %2077 = vmatprep.subr.bf16.mxu1 %v2189_v0 }
  0xcb   :  { %2062 = vmatpush3.bf16.msra.mxu0 %v2546_v46  ;;  %2078 = vmatpush3.bf16.msra.mxu1 %v2553_v47 }
  0xcc   :  { %2063 = vmatprep.subr.bf16.mxu0 %v2189_v0  ;;  %2079 = vmatprep.subr.bf16.mxu1 %v2189_v0 }
  0xcf   :  { %2064 = vmatpush3.bf16.msra.mxu0 %v2560_v48  ;;  %2080 = vmatpush3.bf16.msra.mxu1 %v2567_v49 }
  0xd0   :  { %2065 = vmatprep.subr.bf16.mxu0 %v2189_v0  ;;  %2081 = vmatprep.subr.bf16.mxu1 %v2189_v0 }
  0xd3   :  { %2066 = vmatpush3.bf16.msra.mxu0 %v2574_v50  ;;  %2082 = vmatpush3.bf16.msra.mxu1 %v2581_v51 }
  0xd4   :  { %2067 = vmatprep.subr.bf16.mxu0 %v2189_v0  ;;  %2083 = vmatprep.subr.bf16.mxu1 %v2189_v0 }
  0xd7   :  { %2068 = vmatpush3.bf16.msra.mxu0 %v2588_v52  ;;  %2084 = vmatpush3.bf16.msra.mxu1 %v2595_v53 }
  0xd8   :  { %2089 = vmatprep.subr.bf16.mxu0 %v2189_v0  ;;  %2105 = vmatprep.subr.bf16.mxu1 %v2189_v0 }
  0xda   :  { %v136_v2 = vpop.f32.mrf.mxu0  ;;  %2070 = vmatmul.mubr.msk.bf16.vlgmr.msra.gmra.mxu0 %vm98_vm1, %v2300_v13  ;;  %v221_v3 = vpop.f32.mrf.mxu1  ;;  %2086 = vmatmul.mubr.msk.bf16.vlgmr.msra.gmra.mxu1 %vm98_vm1, %v2407_v28 }
  0xdb   :  { %2090 = vmatpush3.bf16.msra.mxu0 %v2602_v54  ;;  %v222_v4 = vadd.f32 %v221_v3, %v136_v2  ;;  %2106 = vmatpush3.bf16.msra.mxu1 %v2609_v55 }
  0xdc   :  { %v1815_v5 = vpop.f32.mrf.mxu0  ;;  %2091 = vmatprep.subr.bf16.mxu0 %v2189_v0  ;;  %v1831_v6 = vpop.f32.mrf.mxu1  ;;  %2107 = vmatprep.subr.bf16.mxu1 %v2189_v0 }
  0xdd   :  { %2101 = vmatprep.mubr.msk.bf16.mxu0 %vm2190_vm0, %v2189_v0  ;;  %2117 = vmatprep.mubr.msk.bf16.mxu1 %vm2190_vm0, %v2189_v0 }
  0xde   :  { %v139_v7 = vpop.f32.mrf.mxu0  ;;  %v224_v8 = vpop.f32.mrf.mxu1 }
  0xdf   :  { %2092 = vmatpush3.bf16.msra.mxu0 %v2620_v56  ;;  %v225_v9 = vadd.f32 %v224_v8, %v139_v7  ;;  %2108 = vmatpush3.bf16.msra.mxu1 %v2627_v57 }
  0xe0   :  { %v1816_v10 = vpop.f32.mrf.mxu0  ;;  %2093 = vmatprep.subr.bf16.mxu0 %v2189_v0  ;;  %v1832_v11 = vpop.f32.mrf.mxu1  ;;  %2109 = vmatprep.subr.bf16.mxu1 %v2189_v0 }
  0xe3   :  { %2094 = vmatpush3.bf16.msra.mxu0 %v2638_v58  ;;  %2110 = vmatpush3.bf16.msra.mxu1 %v2645_v59 }
  0xe4   :  { %2095 = vmatprep.subr.bf16.mxu0 %v2189_v0  ;;  %2111 = vmatprep.subr.bf16.mxu1 %v2189_v0 }
  0xe7   :  { %2096 = vmatpush3.bf16.msra.mxu0 %v2652_v60  ;;  %2112 = vmatpush3.bf16.msra.mxu1 %v2876_v12 }
  0xe8   :  { %2097 = vmatprep.subr.bf16.mxu0 %v2189_v0  ;;  %2113 = vmatprep.subr.bf16.mxu1 %v2189_v0 }
  0xeb   :  { %2098 = vmatpush3.bf16.msra.mxu0 %v2666_v62  ;;  %2114 = vmatpush3.bf16.msra.mxu1 %v2673_v63 }
  0xec   :  { %2099 = vmatprep.subr.bf16.mxu0 %v2189_v0  ;;  %2115 = vmatprep.subr.bf16.mxu1 %v2189_v0 }
  0xef   :  { %2100 = vmatpush3.bf16.msra.mxu0 %v2680_v14  ;;  %2116 = vmatpush3.bf16.msra.mxu1 %v2687_v61 }
  0xf2   :  { %v319_v13 = vpop.f32.mrf.mxu0  ;;  %2102 = vmatmul.mubr.msk.bf16.vlgmr.msra.gmra.mxu0 %vm98_vm1, %v2504_v41  ;;  %v419_v16 = vpop.f32.mrf.mxu1  ;;  %2118 = vmatmul.mubr.msk.bf16.vlgmr.msra.gmra.mxu1 %vm98_vm1, %v2789_v1 }
  0xf3   :  { %v326_v15 = vadd.f32 %v319_v13, %v222_v4 }
  0xf4   :  { %v1847_v17 = vpop.f32.mrf.mxu0  ;;  %v1863_v19 = vpop.f32.mrf.mxu1 }
  0xf5   :  { %v426_v18 = vadd.f32 %v419_v16, %v326_v15 }
  0xf6   :  { %v322_v20 = vpop.f32.mrf.mxu0  ;;  %v422_v22 = vpop.f32.mrf.mxu1 }
  0xf7   :  { %v327_v21 = vadd.f32 %v322_v20, %v225_v9 }
  0xf8   :  { %v1848_v0 = vpop.f32.mrf.mxu0  ;;  %v1864_v24 = vpop.f32.mrf.mxu1 }
  0xf9   :  { %v427_v23 = vadd.f32 %v422_v22, %v327_v21 }
 0x10a   :  { %v519_v25 = vpop.f32.mrf.mxu0  ;;  %v624_v27 = vpop.f32.mrf.mxu1 }
 0x10b   :  { %v526_v26 = vadd.f32 %v519_v25, %v426_v18 }
 0x10c   :  { %v1879_v28 = vpop.f32.mrf.mxu0  ;;  %v1895_v29 = vpop.f32.mrf.mxu1 }
 0x10e   :  { %v522_v30 = vpop.f32.mrf.mxu0  ;;  %v627_v32 = vpop.f32.mrf.mxu1 }
 0x10f   :  { %v2861_v31 = vadd.f32 %v522_v30, %v427_v23 }
 0x110   :  { %v1880_v33 = vpop.f32.mrf.mxu0  ;;  %v1896_v34 = vpop.f32.mrf.mxu1 }
 0x122   :  { %v701_v35 = vpop.f32.mrf.mxu0  ;;  %v791_v37 = vpop.f32.mrf.mxu1 }
 0x123   :  { %v702_v36 = vadd.f32 %v701_v35, %v624_v27 }
 0x124   :  { %v1911_v38 = vpop.f32.mrf.mxu0  ;;  %v1927_v40 = vpop.f32.mrf.mxu1 }
 0x125   :  { %v798_v39 = vadd.f32 %v791_v37, %v702_v36 }
 0x126   :  { %v704_v41 = vpop.f32.mrf.mxu0  ;;  %v794_v43 = vpop.f32.mrf.mxu1 }
 0x127   :  { %v705_v42 = vadd.f32 %v704_v41, %v627_v32 }
 0x128   :  { %v1912_v44 = vpop.f32.mrf.mxu0  ;;  %v1928_v46 = vpop.f32.mrf.mxu1 }
 0x129   :  { %v799_v45 = vadd.f32 %v794_v43, %v705_v42 }
 0x13a   :  { %v883_v47 = vpop.f32.mrf.mxu0  ;;  %v975_v49 = vpop.f32.mrf.mxu1 }
 0x13b   :  { %v890_v48 = vadd.f32 %v883_v47, %v798_v39 }
 0x13c   :  { %v1943_v50 = vpop.f32.mrf.mxu0  ;;  %v1959_v52 = vpop.f32.mrf.mxu1 }
 0x13d   :  { %v982_v51 = vadd.f32 %v975_v49, %v890_v48  ;;  %v1651_v49 = vld [vmem:[%s2872_s2] ss:$0 sm:$0xff] }
 0x13e   :  { %v886_v53 = vpop.f32.mrf.mxu0  ;;  %v978_v56 = vpop.f32.mrf.mxu1 }
 0x13f   :  { %v984_v54 = vmax.f32 %v526_v26, %v982_v51  ;;  %v891_v55 = vadd.f32 %v886_v53, %v799_v45 }
 0x140   :  { %v1944_v57 = vpop.f32.mrf.mxu0  ;;  %v1960_v59 = vpop.f32.mrf.mxu1 }
 0x141   :  { %v983_v58 = vadd.f32 %v978_v56, %v891_v55 }
 0x143   :  { %v985_v60 = vmax.f32 %v2861_v31, %v983_v58 }
 0x152   :  { %v1020_v61 = vpop.f32.mrf.mxu0  ;;  %v1061_v62 = vpop.f32.mrf.mxu1 }
 0x153   :  { %v1062_v63 = vadd.f32 %v1061_v62, %v1020_v61 }
 0x154   :  { %v1975_v14 = vpop.f32.mrf.mxu0  ;;  %v1991_v1 = vpop.f32.mrf.mxu1 }
 0x156   :  { %v1023_v2 = vpop.f32.mrf.mxu0  ;;  %v1064_v3 = vpop.f32.mrf.mxu1 }
 0x157   :  { %v1065_v4 = vadd.f32 %v1064_v3, %v1023_v2 }
 0x158   :  { %v1976_v5 = vpop.f32.mrf.mxu0  ;;  %v1992_v6 = vpop.f32.mrf.mxu1 }
 0x16a   :  { %v1102_v7 = vpop.f32.mrf.mxu0  ;;  %v1145_v9 = vpop.f32.mrf.mxu1 }
 0x16b   :  { %v1109_v8 = vadd.f32 %v1102_v7, %v1062_v63 }
 0x16c   :  { %v2007_v10 = vpop.f32.mrf.mxu0  ;;  %v2023_v12 = vpop.f32.mrf.mxu1 }
 0x16d   :  { %v1152_v11 = vadd.f32 %v1145_v9, %v1109_v8 }
 0x16e   :  { %v1105_v13 = vpop.f32.mrf.mxu0  ;;  %v1148_v16 = vpop.f32.mrf.mxu1 }
 0x16f   :  { %v1110_v15 = vadd.f32 %v1105_v13, %v1065_v4 }
 0x170   :  { %v2008_v17 = vpop.f32.mrf.mxu0  ;;  %v2024_v19 = vpop.f32.mrf.mxu1 }
 0x171   :  { %v1153_v18 = vadd.f32 %v1148_v16, %v1110_v15 }
 0x182   :  { %v1196_v20 = vpop.f32.mrf.mxu0  ;;  %v1241_v22 = vpop.f32.mrf.mxu1 }
 0x183   :  { %v1203_v21 = vadd.f32 %v1196_v20, %v1152_v11 }
 0x184   :  { %v2039_v0 = vpop.f32.mrf.mxu0  ;;  %v2055_v24 = vpop.f32.mrf.mxu1 }
 0x185   :  { %v1205_v23 = vmax.f32 %v984_v54, %v1203_v21 }
 0x186   :  { %v1199_v25 = vpop.f32.mrf.mxu0  ;;  %v1244_v27 = vpop.f32.mrf.mxu1 }
 0x187   :  { %v1204_v26 = vadd.f32 %v1199_v25, %v1153_v18 }
 0x188   :  { %v2040_v28 = vpop.f32.mrf.mxu0  ;;  %v2056_v30 = vpop.f32.mrf.mxu1 }
 0x189   :  { %v1206_v29 = vmax.f32 %v985_v60, %v1204_v26 }
 0x19a   :  { %v1282_v31 = vpop.f32.mrf.mxu0  ;;  %v1323_v32 = vpop.f32.mrf.mxu1 }
 0x19b   :  { %v1283_v39 = vadd.f32 %v1282_v31, %v1241_v22 }
 0x19c   :  { %v2071_v33 = vpop.f32.mrf.mxu0  ;;  %v2087_v34 = vpop.f32.mrf.mxu1 }
 0x19d   :  { %v1330_v40 = vadd.f32 %v1323_v32, %v1283_v39 }
 0x19e   :  { %v1285_v35 = vpop.f32.mrf.mxu0  ;;  %v1326_v36 = vpop.f32.mrf.mxu1 }
 0x19f   :  { %v1286_v41 = vadd.f32 %v1285_v35, %v1244_v27 }
 0x1a0   :  { %v2072_v37 = vpop.f32.mrf.mxu0  ;;  %v2088_v38 = vpop.f32.mrf.mxu1 }
 0x1a1   :  { %v1331_v46 = vadd.f32 %v1326_v36, %v1286_v41 }
 0x1b2   :  { %v1366_v42 = vpop.f32.mrf.mxu0  ;;  %v1409_v44 = vpop.f32.mrf.mxu1 }
 0x1b3   :  { %v1373_v43 = vadd.f32 %v1366_v42, %v1330_v40 }
 0x1b4   :  { %v2103_v45 = vpop.f32.mrf.mxu0  ;;  %v2119_v48 = vpop.f32.mrf.mxu1 }
 0x1b5   :  { %v1416_v47 = vadd.f32 %v1409_v44, %v1373_v43 }
 0x1b6   :  { %v1369_v50 = vpop.f32.mrf.mxu0  ;;  %v1412_v53 = vpop.f32.mrf.mxu1 }
 0x1b7   :  { %v1418_v51 = vmax.f32 %v1205_v23, %v1416_v47  ;;  %v1374_v52 = vadd.f32 %v1369_v50, %v1331_v46 }
 0x1b8   :  { %v2104_v54 = vpop.f32.mrf.mxu0  ;;  %v2120_v57 = vpop.f32.mrf.mxu1 }
 0x1b9   :  { %v1427_v55 = vadd.f32 %v1651_v49, %v1418_v51  ;;  %v1417_v56 = vadd.f32 %v1412_v53, %v1374_v52 }
 0x1bb   :  { %v1419_v58 = vmax.f32 %v1206_v29, %v1417_v56  ;;  %v1429_v59 = vmul.f32 0.01, %v1427_v55 }
 0x1bd   :  { %v1428_v60 = vadd.f32 %v1651_v49, %v1419_v58  ;;  %v1431_v62 = vmax.f32 %v1427_v55, %v1429_v59 }
 0x1bf   :  { %v1430_v61 = vmul.f32 0.01, %v1428_v60 }
 0x1c1   :  { %v1432_v63 = vmax.f32 %v1428_v60, %v1430_v61 }
 0x1c3   :  { %v1659_v14 = vpack.c.bf16 %v1432_v63, %v1431_v62 }
 0x1c5   :  { %1660 = vst [vmem:[%s2873_s3] sm:$0xff] %v1659_v14  }

// kernel: cnn2_forward.5
= control target key start
LH: loop header
LB: loop body
LE: loop exit
PB: predicated region body
PF: predicated region fallthrough
CT: control target
= control target key end

     0   :  { %v715_v2 = vmov 0.0   ;;  %vm716_vm0 = vmmov 0   ;;  %vm230_vm1 = vcmask 1041408   ;;  %v89_v15 = vlaneseq  ;;  %s897_s0 = inlined_call_operand.vmem [shape: bf16[2,324], index: 0, kind: input, shape index: {}]   ;;  %s898_s1 = inlined_call_operand.vmem [shape: bf16[324,54], index: 1, kind: input, shape index: {}]   ;;  %s899_s2 = inlined_call_operand.vmem [shape: f32[1,54], index: 2, kind: input, shape index: {}]   ;;  %s900_s3 = inlined_call_operand.vmem [shape: bf16[54,128], index: 3, kind: input, shape index: {}]   ;;  %s901_s4 = inlined_call_operand.vmem [shape: f32[1,128], index: 4, kind: input, shape index: {}]   ;;  %s902_s5 = inlined_call_operand.vmem [shape: bf16[128,128], index: 5, kind: input, shape index: {}]   ;;  %s903_s6 = inlined_call_operand.vmem [shape: f32[1,128], index: 6, kind: input, shape index: {}]   ;;  %s904_s7 = inlined_call_operand.hbm [shape: f32[2,128], index: 7, kind: output, shape index: {}]  }
   0x1   :  { %v660_v0 = vld [vmem:[%s898_s1 + $0x78] sm:$0xff]   ;;  %610 = vmatprep.subr.bf16.mxu1 %v715_v2  ;;  %v662_v3 = vld [vmem:[%s898_s1 + $0x70] sm:$0xff]   ;;  %v664_v5 = vld [vmem:[%s898_s1 + $0x68] sm:$0xff]   ;;  %620 = vmatprep.mubr.msk.bf16.mxu1 %vm716_vm0, %v715_v2  ;;  %vm226_vm2 = vcmask 556032   ;;  %v717_v24 = vmov 1966171168  }
   0x2   :  { %v661_v1 = vld [vmem:[%s898_s1 + $0x38] sm:$0xff]   ;;  %568 = vmatprep.subr.bf16.mxu0 %v660_v0  ;;  %v663_v4 = vld [vmem:[%s898_s1 + $0x30] sm:$0xff]   ;;  %v665_v6 = vld [vmem:[%s898_s1 + $0x28] sm:$0xff]   ;;  %v90_v19 = vshrl.u32 %v89_v15, 7  ;;  %v87_v25 = vunpack.c.l.s4 %v717_v24 }
   0x3   :  { %569 = vmatpush3.bf16.msra.mxu0 %v661_v1  ;;  %v666_v7 = vld [vmem:[%s898_s1 + $0x60] sm:$0xff]   ;;  %v671_v11 = vld [vmem:[%s898_s1 + $0x98] sm:$0xff]   ;;  %v674_v14 = vld [vmem:[%s898_s1 + $0x90] sm:$0xff]  }
   0x4   :  { %570 = vmatprep.subr.bf16.mxu0 %v662_v3  ;;  %v668_v8 = vld [vmem:[%s898_s1 + $0xa0] ss:$0 sps:$4 sm:$0x33]   ;;  %v669_v12 = vld [vmem:[%s898_s1 + $0x58] sm:$0xff]   ;;  %v672_v16 = vld [vmem:[%s898_s1 + $0x50] sm:$0xff]   ;;  %v88_v28 = vunpack.c.0.s8 %v87_v25 }
   0x5   :  { %v667_v9 = vld [vmem:[%s898_s1 + $0x20] sm:$0xff]   ;;  %v232_v10 = vsel %vm230_vm1, %v668_v8, 0  ;;  %v670_v13 = vld [vmem:[%s898_s1 + $0x18] sm:$0xff]   ;;  %v673_v17 = vld [vmem:[%s898_s1 + $0x10] sm:$0xff]  }
   0x6   :  { %611 = vmatpush3.bf16.msra.mxu1 %v232_v10  ;;  %v677_v18 = vld [vmem:[%s898_s1 + $0x88] sm:$0xff]   ;;  %v680_v22 = vld [vmem:[%s898_s1 + $0x80] sm:$0xff]   ;;  %v91_v30 = vsub.s32 %v88_v28, %v90_v19 }
   0x7   :  { %571 = vmatpush3.bf16.msra.mxu0 %v663_v4  ;;  %612 = vmatprep.subr.bf16.mxu1 %v715_v2  ;;  %v675_v20 = vld [vmem:[%s898_s1 + $0x48] sm:$0xff]   ;;  %v530_v23 = vld.sshfl [vmem:[%s897_s0] sm:$0x13 pattern:$0x75316420] }
   0x8   :  { %572 = vmatprep.subr.bf16.mxu0 %v664_v5  ;;  %v676_v21 = vld [vmem:[%s898_s1 + $0x8] sm:$0xff]   ;;  %v678_v26 = vld [vmem:[%s898_s1 + $0x40] sm:$0xff]   ;;  %v85_v27 = vcombine.high %v530_v23, %v530_v23  ;;  %v92_v32 = vrot.slane %v530_v23, %v91_v30 }
   0x9   :  { %v679_v29 = vld [vmem:[%s898_s1] sm:$0xff]  }
   0xa   :  { %613 = vmatpush3.bf16.msra.mxu1 %v671_v11  ;;  %v99_v31 = vrot.slane %v85_v27, %v91_v30  ;;  %v100_v33 = vcombine.high %v92_v32, %v92_v32 }
   0xb   :  { %573 = vmatpush3.bf16.msra.mxu0 %v665_v6  ;;  %614 = vmatprep.subr.bf16.mxu1 %v715_v2 }
   0xc   :  { %574 = vmatprep.subr.bf16.mxu0 %v666_v7  ;;  %266 = vmatprep.mubr.bf16.mxu0 %v99_v31 }
   0xe   :  { %615 = vmatpush3.bf16.msra.mxu1 %v674_v14 }
   0xf   :  { %575 = vmatpush3.bf16.msra.mxu0 %v667_v9  ;;  %616 = vmatprep.subr.bf16.mxu1 %v715_v2 }
  0x10   :  { %576 = vmatprep.subr.bf16.mxu0 %v669_v12 }
  0x12   :  { %617 = vmatpush3.bf16.msra.mxu1 %v677_v18 }
  0x13   :  { %577 = vmatpush3.bf16.msra.mxu0 %v670_v13  ;;  %618 = vmatprep.subr.bf16.mxu1 %v715_v2 }
  0x14   :  { %578 = vmatprep.subr.bf16.mxu0 %v672_v16 }
  0x16   :  { %619 = vmatpush3.bf16.msra.mxu1 %v680_v22 }
  0x17   :  { %579 = vmatpush3.bf16.msra.mxu0 %v673_v17  ;;  %624 = vmatprep.subr.bf16.mxu1 %v715_v2 }
  0x18   :  { %580 = vmatprep.subr.bf16.mxu0 %v675_v20 }
  0x1b   :  { %581 = vmatpush3.bf16.msra.mxu0 %v676_v21 }
  0x1c   :  { %582 = vmatprep.subr.bf16.mxu0 %v678_v26 }
  0x1d   :  { %12 = vsyncpa [#allocation3], 0  ;;  %621 = vmatmul.mubr.msk.bf16.vlgmr.msra.gmra.mxu1 %vm226_vm2, %v100_v33  ;;  %v681_v34 = vld [vmem:[%s900_s3 + $0x18] ss:$0 sps:$4 sm:$0x77]   ;;  %vm356_vm3 = vcmask 1042432  }
  0x1e   :  { %632 = vmatprep.mubr.msk.bf16.mxu1 %vm716_vm0, %v715_v2  ;;  %v358_v35 = vsel %vm356_vm3, %v681_v34, 0  ;;  %v682_v36 = vld [vmem:[%s900_s3 + $0x10] sm:$0xff]   ;;  %v683_v37 = vld [vmem:[%s900_s3 + $0x8] sm:$0xff]   ;;  %v684_v38 = vld [vmem:[%s900_s3] sm:$0xff]   ;;  %vm352_vm4 = vcmask 441344   ;;  %s718_s23 = smov [#allocation2]  }
  0x1f   :  { %583 = vmatpush3.bf16.msra.mxu0 %v679_v29  ;;  %625 = vmatpush3.bf16.msra.mxu1 %v358_v35  ;;  %v685_v39 = vld [vmem:[%s902_s5 + $0x38] sm:$0xff]   ;;  %v686_v40 = vld [vmem:[%s902_s5 + $0x30] sm:$0xff]   ;;  %v687_v41 = vld [vmem:[%s902_s5 + $0x28] sm:$0xff]  }
  0x20   :  { %636 = vmatprep.subr.bf16.mxu0 %v715_v2  ;;  %626 = vmatprep.subr.bf16.mxu1 %v715_v2  ;;  %v688_v42 = vld [vmem:[%s902_s5 + $0x20] sm:$0xff]   ;;  %v689_v43 = vld [vmem:[%s902_s5 + $0x18] sm:$0xff]   ;;  %v690_v44 = vld [vmem:[%s902_s5 + $0x10] sm:$0xff]  }
  0x21   :  { %v529_v49 = vld [vmem:[%s899_s2] ss:$0 sm:$0xff]  ;;  %v691_v60 = vld [vmem:[%s902_s5 + $0x8] sm:$0xff]  }
  0x22   :  { %267 = vmatmul.mubr.bf16.vlgmr.msra.gmra.mxu0 %v92_v32  ;;  %v692_v61 = vld [vmem:[%s902_s5] sm:$0xff]   ;;  %s521_s5 = sshll.u32 %s718_s23, 4  ;;  %s522_s5 = int_to_ptr.vmem [resolvable:$true] %s521_s5 }
  0x23   :  { %652 = vmatprep.mubr.msk.bf16.mxu0 %vm716_vm0, %v715_v2  ;;  %627 = vmatpush3.bf16.msra.mxu1 %v682_v36  ;;  %v553_v62 = vld [vmem:[%s901_s4] ss:$0 sm:$0xff]  ;;  %s693_s4 = scalar_lea.vmem %s522_s5, 32  ;;  %p698_p1 = scmp.lt.s32.totalorder %s522_s5, %s522_s5 }
  0x24   :  { %628 = vmatprep.subr.bf16.mxu1 %v715_v2  ;;  %637 = vmatpush3.bf16.msra.mxu0 %v685_v39  ;;  %p694_p0 = scmp.ne.s32.totalorder %s522_s5, %s693_s4  ;;  %p699_p2 = scmp.lt.s32.totalorder %s693_s4, %s693_s4 }
  0x25   :  { %638 = vmatprep.subr.bf16.mxu0 %v715_v2 }
  0x26   :  { %p700_p3 = por %p699_p2, %p698_p1 }
  0x27   :  { %629 = vmatpush3.bf16.msra.mxu1 %v683_v37 }
  0x28   :  { %630 = vmatprep.subr.bf16.mxu1 %v715_v2  ;;  %639 = vmatpush3.bf16.msra.mxu0 %v686_v40  ;;  %p701_p4 = pnand %p700_p3, %p694_p0 }
  0x29   :  { %640 = vmatprep.subr.bf16.mxu0 %v715_v2 }
  0x2b   :  { %631 = vmatpush3.bf16.msra.mxu1 %v684_v38 }
  0x2c   :  { %641 = vmatpush3.bf16.msra.mxu0 %v687_v41 }
  0x2d   :  { %642 = vmatprep.subr.bf16.mxu0 %v715_v2 }
  0x30   :  { %643 = vmatpush3.bf16.msra.mxu0 %v688_v42 }
  0x31   :  { %644 = vmatprep.subr.bf16.mxu0 %v715_v2 }
  0x34   :  { %645 = vmatpush3.bf16.msra.mxu0 %v689_v43 }
  0x35   :  { %646 = vmatprep.subr.bf16.mxu0 %v715_v2 }
  0x38   :  { %647 = vmatpush3.bf16.msra.mxu0 %v690_v44 }
  0x39   :  { %648 = vmatprep.subr.bf16.mxu0 %v715_v2 }
  0x3c   :  { %649 = vmatpush3.bf16.msra.mxu0 %v691_v60 }
  0x3d   :  { %650 = vmatprep.subr.bf16.mxu0 %v715_v2  ;;  %v559_v2 = vld [vmem:[%s903_s6] ss:$0 sm:$0xff] }
  0x40   :  { %651 = vmatpush3.bf16.msra.mxu0 %v692_v61 }
  0xdd   :  { %v308_v45 = vpop.f32.mrf.mxu1 }
  0xdf   :  { %v622_v46 = vpop.f32.mrf.mxu1 }
  0xe1   :  { %v311_v48 = vpop.f32.mrf.mxu1 }
  0xe2   :  { %v584_v47 = vpop.f32.mrf.mxu0 }
  0xe3   :  { %v623_v52 = vpop.f32.mrf.mxu1 }
  0xe4   :  { %v585_v50 = vpop.f32.mrf.mxu0 }
  0xe5   :  { %v586_v51 = vadd.f32 %v585_v50, %v584_v47 }
  0xe6   :  { %v587_v53 = vpop.f32.mrf.mxu0 }
  0xe7   :  { %v269_v54 = vadd.f32 %v586_v51, %v529_v49 }
  0xe8   :  { %v588_v55 = vpop.f32.mrf.mxu0 }
  0xe9   :  { %v309_v56 = vadd.f32 %v308_v45, %v269_v54 }
  0xeb   :  { %v314_v57 = vmul.f32 0.01, %v309_v56 }
  0xed   :  { %v315_v58 = vmax.f32 %v309_v56, %v314_v57 }
  0xef   :  { %v316_v59 = vpack.c.bf16 %v315_v58, %v315_v58 }
  0xf1   :  { %633 = vmatmul.mubr.msk.bf16.vlgmr.msra.gmra.mxu1 %vm352_vm4, %v316_v59 }
 0x1b1   :  { %v394_v63 = vpop.f32.mrf.mxu1 }
 0x1b2   :  { %v395_v0 = vadd.f32 %v553_v62, %v394_v63 }
 0x1b3   :  { %v634_v1 = vpop.f32.mrf.mxu1 }
 0x1b4   :  { %v400_v3 = vmul.f32 0.01, %v395_v0 }
 0x1b5   :  { %v397_v4 = vpop.f32.mrf.mxu1 }
 0x1b6   :  { %v401_v5 = vmax.f32 %v395_v0, %v400_v3 }
 0x1b7   :  { %v635_v6 = vpop.f32.mrf.mxu1 }
 0x1b8   :  { %v402_v7 = vpack.c.bf16 %v401_v5, %v401_v5 }
 0x1ba   :  { %653 = vmatmul.mubr.bf16.vlgmr.msra.gmra.mxu0 %v402_v7 }
 0x27a   :  { %v508_v8 = vpop.f32.mrf.mxu0 }
 0x27b   :  { %v509_v9 = vadd.f32 %v559_v2, %v508_v8 }
 0x27c   :  { %v654_v10 = vpop.f32.mrf.mxu0 }
 0x27d   :  { %514 = vst [vmem:[#allocation2] sm:$0x3] %v509_v9 }
 0x27e   :  { %v511_v11 = vpop.f32.mrf.mxu0 }
 0x27f   :  { %704 = shalt.err (!%p701_p4)
}
 0x280   :  { %524 = dma.vmem_to_hbm [thread:$0]  %s522_s5, 32, %s904_s7, [#allocation3]   ;;  %v655_v12 = vpop.f32.mrf.mxu0 }
 0x281   :  { %713 = dma.done.wait [#allocation3], 32  }
 0x282   :  { %714 = vsyncadd [#allocation3], 4294967264 }
 0x283   :  { %528 = vsyncpa [#allocation3], 1 }

</bundles_post_ra>
